<compile_context>
chip_gen: v5e
topology: v5e:2x2
jax: 0.10.0
libtpu: 0.0.40
codegen_flags: <defaults>
</compile_context>

<pallas_src>
import jax
import jax.numpy as jnp
from jax import lax
from jax.experimental import pallas as pl
from jax.experimental.pallas import tpu as pltpu

# ----------------------------- model config ---------------------------------
VOCAB = 64
EMB_DIM = 32
HID_DIM = 32
NUM_LAYERS = 2
BATCH = 2
SEQ = 8
TIE_WEIGHTS = True  # fc[2].weight = embedding.weight
PAD_V = 128         # lane-dense padded vocab width for the prediction output

# packed-slab row offsets (all 8-aligned so in-kernel sublane slices are free)
_L_WIH = 0            # rows [0, 32)  : w_ih^T   (D_in, 4H)
_L_WHH = 32           # rows [32, 64) : w_hh^T   (H, 4H)
_L_BIAS = 64          # row  64       : b_ih + b_hh
_L_ROWS = 72

_H_FC1W = 0           # rows [0, 32)    : fc1_w^T padded to 128 lanes
_H_FC1B = 32          # row  32         : fc1_b padded
_H_FC2W = 40          # rows [40, 168)  : fc2_w^T padded to (128, 128)
_H_FC2B = 168         # row  168        : fc2_b padded
_H_ROWS = 176


# ----------------------------- fused Pallas kernel --------------------------
def fused_lm_kernel(src_ref,       # (T*B, 1) int32, time-major token ids (VMEM)
                    emb_ref,       # (V, E)
                    layers_ref,    # (L, 72, 4H) packed [wih_t; whh_t; bias]
                    head_ref,      # (176, 128) packed FC head (lane padded)
                    hc0_ref,       # (2, L, B, H) packed (h0, c0)
                    pred_ref,      # (T*B, 128) time-major, lane padded
                    hcT_ref,       # (2, L, B, H) packed (hT, cT)
                    y1_ref,        # scratch (T*B, H): layer-1 outputs
                    y2_ref):       # scratch (T*B, H): layer-2 outputs
    B, T, H, V = BATCH, SEQ, HID_DIM, VOCAB
    H4 = 4 * H

    # ---- one-hot matmul embedding gather (time-major rows: row = t*B + b) ---
    src_col = src_ref[...]                                           # (T*B, 1)
    onehot = (lax.broadcasted_iota(jnp.int32, (T * B, V), 1) == src_col
              ).astype(jnp.float32)                                  # (T*B, V)
    x_all = jnp.dot(onehot, emb_ref[...],
                    preferred_element_type=jnp.float32)              # (T*B, E)

    # ---- hoisted gate-activation constants ----------------------------------
    # sigmoid(x) = 0.5*tanh(x/2) + 0.5  ->  act = s * tanh(s * g) + b
    #   g-gate lanes [2H, 3H): s = 1.0, b = 0.0   (plain tanh)
    #   i/f/o lanes           : s = 0.5, b = 0.5   (sigmoid)
    lane = lax.broadcasted_iota(jnp.int32, (B, H4), 1)
    is_g = (lane >= 2 * H) & (lane < 3 * H)
    s_vec = jnp.where(is_g, 1.0, 0.5).astype(jnp.float32)            # (B, 4H)
    b_vec = jnp.where(is_g, 0.0, 0.5).astype(jnp.float32)            # (B, 4H)

    def run_layer(l, x_tm, out_ref, h, c):
        wih_t = layers_ref[l, _L_WIH:_L_WIH + 32, :]                 # (32, 4H)
        whh_t = layers_ref[l, _L_WHH:_L_WHH + 32, :]                 # (H, 4H)
        bias = layers_ref[l, _L_BIAS:_L_BIAS + 1, :]                 # (1, 4H)
        # hoisted input projection: one (T*B, D) x (D, 4H) matmul + bias add
        gates_x = jnp.dot(x_tm, wih_t,
                          preferred_element_type=jnp.float32) + bias
        for t in range(T):                       # fully unrolled (T static)
            g = gates_x[t * B:(t + 1) * B, :] + jnp.dot(
                h, whh_t, preferred_element_type=jnp.float32)        # (B, 4H)
            act = s_vec * jnp.tanh(s_vec * g) + b_vec                # 1 EUP pass
            i_g = act[:, 0 * H:1 * H]
            f_g = act[:, 1 * H:2 * H]
            g_g = act[:, 2 * H:3 * H]
            o_g = act[:, 3 * H:4 * H]
            c = f_g * c + i_g * g_g
            h = o_g * jnp.tanh(c)
            out_ref[t * B:(t + 1) * B, :] = h    # row store into VMEM scratch
        return h, c

    # ---- layer 0 -------------------------------------------------------------
    h, c = run_layer(0, x_all, y1_ref, hc0_ref[0, 0], hc0_ref[1, 0])
    hcT_ref[0, 0] = h
    hcT_ref[1, 0] = c

    # ---- layer 1 -------------------------------------------------------------
    h, c = run_layer(1, y1_ref[...], y2_ref, hc0_ref[0, 1], hc0_ref[1, 1])
    hcT_ref[0, 1] = h
    hcT_ref[1, 1] = c

    # ---- FC head on the time-major layer-2 output (lane-dense, 128 wide) ----
    y2 = y2_ref[...]                                                 # (T*B, H)
    fc1w = head_ref[_H_FC1W:_H_FC1W + 32, :]                         # (H, 128)
    fc1b = head_ref[_H_FC1B:_H_FC1B + 1, :]                          # (1, 128)
    fc2w = head_ref[_H_FC2W:_H_FC2W + 128, :]                        # (128, 128)
    fc2b = head_ref[_H_FC2B:_H_FC2B + 1, :]                          # (1, 128)
    h_mid = jnp.tanh(jnp.dot(y2, fc1w,
                             preferred_element_type=jnp.float32) + fc1b)
    pred_ref[...] = jnp.dot(h_mid, fc2w,
                            preferred_element_type=jnp.float32) + fc2b


# ----------------------------- wrappers --------------------------------------
_VMEM = pl.BlockSpec(memory_space=pltpu.MemorySpace.VMEM)


def prepare_kernel_params(params):
    """One-time layout prep: packed slabs, transposes, bias folds, lane padding."""
    H4 = 4 * HID_DIM
    layer_slabs = []
    for l in range(NUM_LAYERS):
        slab = jnp.zeros((_L_ROWS, H4), jnp.float32)
        slab = slab.at[_L_WIH:_L_WIH + 32, :].set(params[f"w_ih_l{l}"].T)
        slab = slab.at[_L_WHH:_L_WHH + 32, :].set(params[f"w_hh_l{l}"].T)
        slab = slab.at[_L_BIAS, :].set(params[f"b_ih_l{l}"] + params[f"b_hh_l{l}"])
        layer_slabs.append(slab)
    layers_slab = jnp.stack(layer_slabs, axis=0)          # (L, 72, 4H)

    head = jnp.zeros((_H_ROWS, PAD_V), jnp.float32)
    head = head.at[_H_FC1W:_H_FC1W + HID_DIM, 0:EMB_DIM].set(params["fc1_w"].T)
    head = head.at[_H_FC1B, 0:EMB_DIM].set(params["fc1_b"])
    head = head.at[_H_FC2W:_H_FC2W + EMB_DIM, 0:VOCAB].set(params["fc2_w"].T)
    head = head.at[_H_FC2B, 0:VOCAB].set(params["fc2_b"])

    return {
        "emb": params["embedding"],                        # (V, E)
        "layers_slab": layers_slab,                        # (L, 72, 4H)
        "head_slab": head,                                 # (176, 128)
    }


@jax.jit
def baseline_lm_forward(src, hidden, kparams):
    """src: (B, T) int32 token ids; hidden: (h0, c0) each (L, B, H)."""
    h0, c0 = hidden
    hc0 = jnp.stack([h0, c0], axis=0)                      # (2, L, B, H)
    # time-major token column: row t*B + b  <-  src[b, t]
    src_tm = jnp.transpose(src).reshape(SEQ * BATCH, 1).astype(jnp.int32)

    pred_pad, hcT = pl.pallas_call(
        fused_lm_kernel,
        out_shape=(
            jax.ShapeDtypeStruct((SEQ * BATCH, PAD_V), jnp.float32),
            jax.ShapeDtypeStruct((2, NUM_LAYERS, BATCH, HID_DIM), jnp.float32),
        ),
        in_specs=[_VMEM] * 5,
        out_specs=(_VMEM, _VMEM),
        scratch_shapes=[
            pltpu.VMEM((SEQ * BATCH, HID_DIM), jnp.float32),
            pltpu.VMEM((SEQ * BATCH, HID_DIM), jnp.float32),
        ],
    )(src_tm, kparams["emb"], kparams["layers_slab"], kparams["head_slab"], hc0)

    # (T*B, PAD_V) time-major -> (B, T, V) batch-first
    pred = pred_pad[:, :VOCAB].reshape(SEQ, BATCH, VOCAB).transpose(1, 0, 2)
    return pred, (hcT[0], hcT[1])


# ----------------------------- pure-JAX reference ----------------------------
def _ref_forward(src, hidden, params):
    emb = params["embedding"][src]                # (B, T, E)
    x = emb
    h0s, c0s = hidden
    hTs, cTs = [], []
    for l in range(NUM_LAYERS):
        w_ih, w_hh = params[f"w_ih_l{l}"], params[f"w_hh_l{l}"]
        b = params[f"b_ih_l{l}"] + params[f"b_hh_l{l}"]
        H = HID_DIM
        h, c = h0s[l], c0s[l]
        outs = []
        for t in range(x.shape[1]):
            g = x[:, t, :] @ w_ih.T + h @ w_hh.T + b
            i_g = jax.nn.sigmoid(g[:, :H])
            f_g = jax.nn.sigmoid(g[:, H:2 * H])
            g_g = jnp.tanh(g[:, 2 * H:3 * H])
            o_g = jax.nn.sigmoid(g[:, 3 * H:])
            c = f_g * c + i_g * g_g
            h = o_g * jnp.tanh(c)
            outs.append(h)
        x = jnp.stack(outs, axis=1)
        hTs.append(h)
        cTs.append(c)
    hmid = jnp.tanh(x @ params["fc1_w"].T + params["fc1_b"])
    pred = hmid @ params["fc2_w"].T + params["fc2_b"]
    return pred, (jnp.stack(hTs), jnp.stack(cTs))


# ----------------------------- parameter init --------------------------------
def init_params(key):
    params = {}
    ks = jax.random.split(key, 4 + 4 * NUM_LAYERS)
    ki = iter(ks)
    # nn.Embedding default init: N(0, 1)
    params["embedding"] = jax.random.normal(next(ki), (VOCAB, EMB_DIM), jnp.float32)
    # nn.LSTM default init: U(-1/sqrt(H), 1/sqrt(H))
    bound = 1.0 / (HID_DIM ** 0.5)
    for l in range(NUM_LAYERS):
        din = EMB_DIM if l == 0 else HID_DIM
        params[f"w_ih_l{l}"] = jax.random.uniform(next(ki), (4 * HID_DIM, din),
                                                  jnp.float32, -bound, bound)
        params[f"w_hh_l{l}"] = jax.random.uniform(next(ki), (4 * HID_DIM, HID_DIM),
                                                  jnp.float32, -bound, bound)
        params[f"b_ih_l{l}"] = jax.random.uniform(next(ki), (4 * HID_DIM,),
                                                  jnp.float32, -bound, bound)
        params[f"b_hh_l{l}"] = jax.random.uniform(next(ki), (4 * HID_DIM,),
                                                  jnp.float32, -bound, bound)
    # fc[0]: Linear(H, E), U(-1/sqrt(H), 1/sqrt(H))
    b1 = 1.0 / (HID_DIM ** 0.5)
    params["fc1_w"] = jax.random.uniform(next(ki), (EMB_DIM, HID_DIM),
                                         jnp.float32, -b1, b1)
    params["fc1_b"] = jax.random.uniform(next(ki), (EMB_DIM,), jnp.float32, -b1, b1)
    # fc[2]: Linear(E, V); weight tied to embedding, bias U(-1/sqrt(E), 1/sqrt(E))
    b2 = 1.0 / (EMB_DIM ** 0.5)
    if TIE_WEIGHTS:
        params["fc2_w"] = params["embedding"]              # (V, E)
    else:
        params["fc2_w"] = jax.random.uniform(next(ki), (VOCAB, EMB_DIM),
                                             jnp.float32, -b2, b2)
    params["fc2_b"] = jax.random.uniform(next(ki), (VOCAB,), jnp.float32, -b2, b2)
    # TODO(synk): pretrained GloVe-style embedding load (read_embedding) has no
    # in-script equivalent; embeddings are synthetic/deterministic instead.
    return params


# ----------------------------- main -------------------------------------------
if __name__ == "__main__":
    root = jax.random.PRNGKey(0)
    k_param, k_src = jax.random.split(root)
    params = init_params(k_param)
    kparams = prepare_kernel_params(params)       # one-time layout prep

    src = jax.random.randint(k_src, (BATCH, SEQ), 0, VOCAB, dtype=jnp.int32)
    # init_hidden: zeros (num_layers, batch, hidden) for both h and c (LSTM)
    h0 = jnp.zeros((NUM_LAYERS, BATCH, HID_DIM), jnp.float32)
    c0 = jnp.zeros((NUM_LAYERS, BATCH, HID_DIM), jnp.float32)

    pred, (hT, cT) = baseline_lm_forward(src, (h0, c0), kparams)
    pred = jax.block_until_ready(pred)
    hT = jax.block_until_ready(hT)
    cT = jax.block_until_ready(cT)

    # correctness check against a pure-JAX reference
    pred_ref, (hT_ref, cT_ref) = _ref_forward(src, (h0, c0), params)
    assert pred.shape == (BATCH, SEQ, VOCAB)
    assert hT.shape == (NUM_LAYERS, BATCH, HID_DIM)
    assert cT.shape == (NUM_LAYERS, BATCH, HID_DIM)
    assert jnp.allclose(pred, pred_ref, atol=1e-4, rtol=1e-4)
    assert jnp.allclose(hT, hT_ref, atol=1e-4, rtol=1e-4)
    assert jnp.allclose(cT, cT_ref, atol=1e-4, rtol=1e-4)

    print("KERNEL_OK")
</pallas_src>

<mosaic_0001>
module attributes {stable_mosaic.version = 11 : i64} {
  func.func @fused_lm_kernel(%arg0: memref<16x1xi32, #tpu.memory_space<vmem>>, %arg1: memref<64x32xf32, #tpu.memory_space<vmem>>, %arg2: memref<2x72x128xf32, #tpu.memory_space<vmem>>, %arg3: memref<176x128xf32, #tpu.memory_space<vmem>>, %arg4: memref<2x2x2x32xf32, #tpu.memory_space<vmem>>, %arg5: memref<16x128xf32, #tpu.memory_space<vmem>>, %arg6: memref<2x2x2x32xf32, #tpu.memory_space<vmem>>, %arg7: memref<16x32xf32, #tpu.memory_space<vmem>>, %arg8: memref<16x32xf32, #tpu.memory_space<vmem>>) attributes {dimension_semantics = [], scalar_prefetch = 0 : i64, scratch_operands = 2 : i64, tpu.core_type = #tpu.core_type<tc>} {
    %c0 = arith.constant 0 : index
    %c0_0 = arith.constant 0 : index
    %0 = vector.load %arg0[%c0, %c0_0] : memref<16x1xi32, #tpu.memory_space<vmem>>, vector<16x1xi32>
    %1 = tpu.iota {dimensions = array<i32: 1>} : vector<16x64xi32>
    %2 = vector.broadcast %0 : vector<16x1xi32> to vector<16x64xi32>
    %3 = arith.cmpi eq, %1, %2 : vector<16x64xi32>
    %4 = arith.extui %3 : vector<16x64xi1> to vector<16x64xi32>
    %5 = arith.sitofp %4 : vector<16x64xi32> to vector<16x64xf32>
    %c0_1 = arith.constant 0 : index
    %c0_2 = arith.constant 0 : index
    %6 = vector.load %arg1[%c0_1, %c0_2] : memref<64x32xf32, #tpu.memory_space<vmem>>, vector<64x32xf32>
    %cst = arith.constant dense<0.000000e+00> : vector<16x32xf32>
    %7 = tpu.matmul %5, %6, %cst {dimension_numbers = #tpu.dot_dimension_numbers<[1], [0], [0], [1], [0, 0, 1, 1], [], []>} : vector<16x64xf32>, vector<64x32xf32>, vector<16x32xf32> -> vector<16x32xf32>
    %8 = tpu.iota {dimensions = array<i32: 1>} : vector<2x128xi32>
    %c64_i32 = arith.constant 64 : i32
    %9 = vector.broadcast %c64_i32 : i32 to vector<2x128xi32>
    %10 = arith.cmpi sge, %8, %9 : vector<2x128xi32>
    %c96_i32 = arith.constant 96 : i32
    %11 = vector.broadcast %c96_i32 : i32 to vector<2x128xi32>
    %12 = arith.cmpi slt, %8, %11 : vector<2x128xi32>
    %13 = arith.andi %10, %12 : vector<2x128xi1>
    %cst_3 = arith.constant 1.000000e+00 : f32
    %cst_4 = arith.constant 5.000000e-01 : f32
    %14 = vector.broadcast %cst_3 : f32 to vector<2x128xf32>
    %15 = vector.broadcast %cst_4 : f32 to vector<2x128xf32>
    %16 = arith.select %13, %14, %15 : vector<2x128xi1>, vector<2x128xf32>
    %cst_5 = arith.constant 0.000000e+00 : f32
    %cst_6 = arith.constant 5.000000e-01 : f32
    %17 = vector.broadcast %cst_5 : f32 to vector<2x128xf32>
    %18 = vector.broadcast %cst_6 : f32 to vector<2x128xf32>
    %19 = arith.select %13, %17, %18 : vector<2x128xi1>, vector<2x128xf32>
    %c0_7 = arith.constant 0 : index
    %c0_8 = arith.constant 0 : index
    %c0_9 = arith.constant 0 : index
    %c0_10 = arith.constant 0 : index
    %20 = vector.load %arg4[%c0_7, %c0_8, %c0_9, %c0_10] : memref<2x2x2x32xf32, #tpu.memory_space<vmem>>, vector<1x1x2x32xf32>
    %21 = vector.shape_cast %20 : vector<1x1x2x32xf32> to vector<2x32xf32>
    %c1 = arith.constant 1 : index
    %c0_11 = arith.constant 0 : index
    %c0_12 = arith.constant 0 : index
    %c0_13 = arith.constant 0 : index
    %22 = vector.load %arg4[%c1, %c0_11, %c0_12, %c0_13] : memref<2x2x2x32xf32, #tpu.memory_space<vmem>>, vector<1x1x2x32xf32>
    %23 = vector.shape_cast %22 : vector<1x1x2x32xf32> to vector<2x32xf32>
    %c0_14 = arith.constant 0 : index
    %c0_15 = arith.constant 0 : index
    %c0_16 = arith.constant 0 : index
    %24 = vector.load %arg2[%c0_14, %c0_15, %c0_16] : memref<2x72x128xf32, #tpu.memory_space<vmem>>, vector<1x32x128xf32>
    %25 = vector.shape_cast %24 : vector<1x32x128xf32> to vector<32x128xf32>
    %c0_17 = arith.constant 0 : index
    %c32 = arith.constant 32 : index
    %c0_18 = arith.constant 0 : index
    %26 = vector.load %arg2[%c0_17, %c32, %c0_18] : memref<2x72x128xf32, #tpu.memory_space<vmem>>, vector<1x32x128xf32>
    %27 = vector.shape_cast %26 : vector<1x32x128xf32> to vector<32x128xf32>
    %c0_19 = arith.constant 0 : index
    %c64 = arith.constant 64 : index
    %c0_20 = arith.constant 0 : index
    %28 = vector.load %arg2[%c0_19, %c64, %c0_20] : memref<2x72x128xf32, #tpu.memory_space<vmem>>, vector<1x1x128xf32>
    %29 = vector.shape_cast %28 : vector<1x1x128xf32> to vector<1x128xf32>
    %cst_21 = arith.constant dense<0.000000e+00> : vector<16x128xf32>
    %30 = tpu.matmul %7, %25, %cst_21 {dimension_numbers = #tpu.dot_dimension_numbers<[1], [0], [0], [1], [0, 0, 1, 1], [], []>} : vector<16x32xf32>, vector<32x128xf32>, vector<16x128xf32> -> vector<16x128xf32>
    %31 = vector.broadcast %29 : vector<1x128xf32> to vector<16x128xf32>
    %32 = arith.addf %30, %31 : vector<16x128xf32>
    %33 = vector.extract_strided_slice %32 {offsets = [0, 0], sizes = [2, 128], strides = [1, 1]} : vector<16x128xf32> to vector<2x128xf32>
    %cst_22 = arith.constant dense<0.000000e+00> : vector<2x128xf32>
    %34 = tpu.matmul %21, %27, %cst_22 {dimension_numbers = #tpu.dot_dimension_numbers<[1], [0], [0], [1], [0, 0, 1, 1], [], []>} : vector<2x32xf32>, vector<32x128xf32>, vector<2x128xf32> -> vector<2x128xf32>
    %35 = arith.addf %33, %34 : vector<2x128xf32>
    %36 = arith.mulf %16, %35 : vector<2x128xf32>
    %37 = math.tanh %36 : vector<2x128xf32>
    %38 = arith.mulf %16, %37 : vector<2x128xf32>
    %39 = arith.addf %38, %19 : vector<2x128xf32>
    %40 = vector.extract_strided_slice %39 {offsets = [0, 0], sizes = [2, 32], strides = [1, 1]} : vector<2x128xf32> to vector<2x32xf32>
    %41 = vector.extract_strided_slice %39 {offsets = [0, 32], sizes = [2, 32], strides = [1, 1]} : vector<2x128xf32> to vector<2x32xf32>
    %42 = vector.extract_strided_slice %39 {offsets = [0, 64], sizes = [2, 32], strides = [1, 1]} : vector<2x128xf32> to vector<2x32xf32>
    %43 = vector.extract_strided_slice %39 {offsets = [0, 96], sizes = [2, 32], strides = [1, 1]} : vector<2x128xf32> to vector<2x32xf32>
    %44 = arith.mulf %41, %23 : vector<2x32xf32>
    %45 = arith.mulf %40, %42 : vector<2x32xf32>
    %46 = arith.addf %44, %45 : vector<2x32xf32>
    %47 = math.tanh %46 : vector<2x32xf32>
    %48 = arith.mulf %43, %47 : vector<2x32xf32>
    %c0_23 = arith.constant 0 : index
    %c0_24 = arith.constant 0 : index
    %49 = vector.load %arg7[%c0_23, %c0_24] : memref<16x32xf32, #tpu.memory_space<vmem>>, vector<2x32xf32>
    tpu.vector_store %arg7[%c0_23, %c0_24], %48 {strides = array<i32>} : memref<16x32xf32, #tpu.memory_space<vmem>>, vector<2x32xf32>,
    %50 = vector.extract_strided_slice %32 {offsets = [2, 0], sizes = [2, 128], strides = [1, 1]} : vector<16x128xf32> to vector<2x128xf32>
    %cst_25 = arith.constant dense<0.000000e+00> : vector<2x128xf32>
    %51 = tpu.matmul %48, %27, %cst_25 {dimension_numbers = #tpu.dot_dimension_numbers<[1], [0], [0], [1], [0, 0, 1, 1], [], []>} : vector<2x32xf32>, vector<32x128xf32>, vector<2x128xf32> -> vector<2x128xf32>
    %52 = arith.addf %50, %51 : vector<2x128xf32>
    %53 = arith.mulf %16, %52 : vector<2x128xf32>
    %54 = math.tanh %53 : vector<2x128xf32>
    %55 = arith.mulf %16, %54 : vector<2x128xf32>
    %56 = arith.addf %55, %19 : vector<2x128xf32>
    %57 = vector.extract_strided_slice %56 {offsets = [0, 0], sizes = [2, 32], strides = [1, 1]} : vector<2x128xf32> to vector<2x32xf32>
    %58 = vector.extract_strided_slice %56 {offsets = [0, 32], sizes = [2, 32], strides = [1, 1]} : vector<2x128xf32> to vector<2x32xf32>
    %59 = vector.extract_strided_slice %56 {offsets = [0, 64], sizes = [2, 32], strides = [1, 1]} : vector<2x128xf32> to vector<2x32xf32>
    %60 = vector.extract_strided_slice %56 {offsets = [0, 96], sizes = [2, 32], strides = [1, 1]} : vector<2x128xf32> to vector<2x32xf32>
    %61 = arith.mulf %58, %46 : vector<2x32xf32>
    %62 = arith.mulf %57, %59 : vector<2x32xf32>
    %63 = arith.addf %61, %62 : vector<2x32xf32>
    %64 = math.tanh %63 : vector<2x32xf32>
    %65 = arith.mulf %60, %64 : vector<2x32xf32>
    %c2 = arith.constant 2 : index
    %c0_26 = arith.constant 0 : index
    %66 = vector.load %arg7[%c2, %c0_26] : memref<16x32xf32, #tpu.memory_space<vmem>>, vector<2x32xf32>
    tpu.vector_store %arg7[%c2, %c0_26], %65 {strides = array<i32>} : memref<16x32xf32, #tpu.memory_space<vmem>>, vector<2x32xf32>,
    %67 = vector.extract_strided_slice %32 {offsets = [4, 0], sizes = [2, 128], strides = [1, 1]} : vector<16x128xf32> to vector<2x128xf32>
    %cst_27 = arith.constant dense<0.000000e+00> : vector<2x128xf32>
    %68 = tpu.matmul %65, %27, %cst_27 {dimension_numbers = #tpu.dot_dimension_numbers<[1], [0], [0], [1], [0, 0, 1, 1], [], []>} : vector<2x32xf32>, vector<32x128xf32>, vector<2x128xf32> -> vector<2x128xf32>
    %69 = arith.addf %67, %68 : vector<2x128xf32>
    %70 = arith.mulf %16, %69 : vector<2x128xf32>
    %71 = math.tanh %70 : vector<2x128xf32>
    %72 = arith.mulf %16, %71 : vector<2x128xf32>
    %73 = arith.addf %72, %19 : vector<2x128xf32>
    %74 = vector.extract_strided_slice %73 {offsets = [0, 0], sizes = [2, 32], strides = [1, 1]} : vector<2x128xf32> to vector<2x32xf32>
    %75 = vector.extract_strided_slice %73 {offsets = [0, 32], sizes = [2, 32], strides = [1, 1]} : vector<2x128xf32> to vector<2x32xf32>
    %76 = vector.extract_strided_slice %73 {offsets = [0, 64], sizes = [2, 32], strides = [1, 1]} : vector<2x128xf32> to vector<2x32xf32>
    %77 = vector.extract_strided_slice %73 {offsets = [0, 96], sizes = [2, 32], strides = [1, 1]} : vector<2x128xf32> to vector<2x32xf32>
    %78 = arith.mulf %75, %63 : vector<2x32xf32>
    %79 = arith.mulf %74, %76 : vector<2x32xf32>
    %80 = arith.addf %78, %79 : vector<2x32xf32>
    %81 = math.tanh %80 : vector<2x32xf32>
    %82 = arith.mulf %77, %81 : vector<2x32xf32>
    %c4 = arith.constant 4 : index
    %c0_28 = arith.constant 0 : index
    %83 = vector.load %arg7[%c4, %c0_28] : memref<16x32xf32, #tpu.memory_space<vmem>>, vector<2x32xf32>
    tpu.vector_store %arg7[%c4, %c0_28], %82 {strides = array<i32>} : memref<16x32xf32, #tpu.memory_space<vmem>>, vector<2x32xf32>,
    %84 = vector.extract_strided_slice %32 {offsets = [6, 0], sizes = [2, 128], strides = [1, 1]} : vector<16x128xf32> to vector<2x128xf32>
    %cst_29 = arith.constant dense<0.000000e+00> : vector<2x128xf32>
    %85 = tpu.matmul %82, %27, %cst_29 {dimension_numbers = #tpu.dot_dimension_numbers<[1], [0], [0], [1], [0, 0, 1, 1], [], []>} : vector<2x32xf32>, vector<32x128xf32>, vector<2x128xf32> -> vector<2x128xf32>
    %86 = arith.addf %84, %85 : vector<2x128xf32>
    %87 = arith.mulf %16, %86 : vector<2x128xf32>
    %88 = math.tanh %87 : vector<2x128xf32>
    %89 = arith.mulf %16, %88 : vector<2x128xf32>
    %90 = arith.addf %89, %19 : vector<2x128xf32>
    %91 = vector.extract_strided_slice %90 {offsets = [0, 0], sizes = [2, 32], strides = [1, 1]} : vector<2x128xf32> to vector<2x32xf32>
    %92 = vector.extract_strided_slice %90 {offsets = [0, 32], sizes = [2, 32], strides = [1, 1]} : vector<2x128xf32> to vector<2x32xf32>
    %93 = vector.extract_strided_slice %90 {offsets = [0, 64], sizes = [2, 32], strides = [1, 1]} : vector<2x128xf32> to vector<2x32xf32>
    %94 = vector.extract_strided_slice %90 {offsets = [0, 96], sizes = [2, 32], strides = [1, 1]} : vector<2x128xf32> to vector<2x32xf32>
    %95 = arith.mulf %92, %80 : vector<2x32xf32>
    %96 = arith.mulf %91, %93 : vector<2x32xf32>
    %97 = arith.addf %95, %96 : vector<2x32xf32>
    %98 = math.tanh %97 : vector<2x32xf32>
    %99 = arith.mulf %94, %98 : vector<2x32xf32>
    %c6 = arith.constant 6 : index
    %c0_30 = arith.constant 0 : index
    %100 = vector.load %arg7[%c6, %c0_30] : memref<16x32xf32, #tpu.memory_space<vmem>>, vector<2x32xf32>
    tpu.vector_store %arg7[%c6, %c0_30], %99 {strides = array<i32>} : memref<16x32xf32, #tpu.memory_space<vmem>>, vector<2x32xf32>,
    %101 = vector.extract_strided_slice %32 {offsets = [8, 0], sizes = [2, 128], strides = [1, 1]} : vector<16x128xf32> to vector<2x128xf32>
    %cst_31 = arith.constant dense<0.000000e+00> : vector<2x128xf32>
    %102 = tpu.matmul %99, %27, %cst_31 {dimension_numbers = #tpu.dot_dimension_numbers<[1], [0], [0], [1], [0, 0, 1, 1], [], []>} : vector<2x32xf32>, vector<32x128xf32>, vector<2x128xf32> -> vector<2x128xf32>
    %103 = arith.addf %101, %102 : vector<2x128xf32>
    %104 = arith.mulf %16, %103 : vector<2x128xf32>
    %105 = math.tanh %104 : vector<2x128xf32>
    %106 = arith.mulf %16, %105 : vector<2x128xf32>
    %107 = arith.addf %106, %19 : vector<2x128xf32>
    %108 = vector.extract_strided_slice %107 {offsets = [0, 0], sizes = [2, 32], strides = [1, 1]} : vector<2x128xf32> to vector<2x32xf32>
    %109 = vector.extract_strided_slice %107 {offsets = [0, 32], sizes = [2, 32], strides = [1, 1]} : vector<2x128xf32> to vector<2x32xf32>
    %110 = vector.extract_strided_slice %107 {offsets = [0, 64], sizes = [2, 32], strides = [1, 1]} : vector<2x128xf32> to vector<2x32xf32>
    %111 = vector.extract_strided_slice %107 {offsets = [0, 96], sizes = [2, 32], strides = [1, 1]} : vector<2x128xf32> to vector<2x32xf32>
    %112 = arith.mulf %109, %97 : vector<2x32xf32>
    %113 = arith.mulf %108, %110 : vector<2x32xf32>
    %114 = arith.addf %112, %113 : vector<2x32xf32>
    %115 = math.tanh %114 : vector<2x32xf32>
    %116 = arith.mulf %111, %115 : vector<2x32xf32>
    %c8 = arith.constant 8 : index
    %c0_32 = arith.constant 0 : index
    %117 = vector.load %arg7[%c8, %c0_32] : memref<16x32xf32, #tpu.memory_space<vmem>>, vector<2x32xf32>
    tpu.vector_store %arg7[%c8, %c0_32], %116 {strides = array<i32>} : memref<16x32xf32, #tpu.memory_space<vmem>>, vector<2x32xf32>,
    %118 = vector.extract_strided_slice %32 {offsets = [10, 0], sizes = [2, 128], strides = [1, 1]} : vector<16x128xf32> to vector<2x128xf32>
    %cst_33 = arith.constant dense<0.000000e+00> : vector<2x128xf32>
    %119 = tpu.matmul %116, %27, %cst_33 {dimension_numbers = #tpu.dot_dimension_numbers<[1], [0], [0], [1], [0, 0, 1, 1], [], []>} : vector<2x32xf32>, vector<32x128xf32>, vector<2x128xf32> -> vector<2x128xf32>
    %120 = arith.addf %118, %119 : vector<2x128xf32>
    %121 = arith.mulf %16, %120 : vector<2x128xf32>
    %122 = math.tanh %121 : vector<2x128xf32>
    %123 = arith.mulf %16, %122 : vector<2x128xf32>
    %124 = arith.addf %123, %19 : vector<2x128xf32>
    %125 = vector.extract_strided_slice %124 {offsets = [0, 0], sizes = [2, 32], strides = [1, 1]} : vector<2x128xf32> to vector<2x32xf32>
    %126 = vector.extract_strided_slice %124 {offsets = [0, 32], sizes = [2, 32], strides = [1, 1]} : vector<2x128xf32> to vector<2x32xf32>
    %127 = vector.extract_strided_slice %124 {offsets = [0, 64], sizes = [2, 32], strides = [1, 1]} : vector<2x128xf32> to vector<2x32xf32>
    %128 = vector.extract_strided_slice %124 {offsets = [0, 96], sizes = [2, 32], strides = [1, 1]} : vector<2x128xf32> to vector<2x32xf32>
    %129 = arith.mulf %126, %114 : vector<2x32xf32>
    %130 = arith.mulf %125, %127 : vector<2x32xf32>
    %131 = arith.addf %129, %130 : vector<2x32xf32>
    %132 = math.tanh %131 : vector<2x32xf32>
    %133 = arith.mulf %128, %132 : vector<2x32xf32>
    %c10 = arith.constant 10 : index
    %c0_34 = arith.constant 0 : index
    %134 = vector.load %arg7[%c10, %c0_34] : memref<16x32xf32, #tpu.memory_space<vmem>>, vector<2x32xf32>
    tpu.vector_store %arg7[%c10, %c0_34], %133 {strides = array<i32>} : memref<16x32xf32, #tpu.memory_space<vmem>>, vector<2x32xf32>,
    %135 = vector.extract_strided_slice %32 {offsets = [12, 0], sizes = [2, 128], strides = [1, 1]} : vector<16x128xf32> to vector<2x128xf32>
    %cst_35 = arith.constant dense<0.000000e+00> : vector<2x128xf32>
    %136 = tpu.matmul %133, %27, %cst_35 {dimension_numbers = #tpu.dot_dimension_numbers<[1], [0], [0], [1], [0, 0, 1, 1], [], []>} : vector<2x32xf32>, vector<32x128xf32>, vector<2x128xf32> -> vector<2x128xf32>
    %137 = arith.addf %135, %136 : vector<2x128xf32>
    %138 = arith.mulf %16, %137 : vector<2x128xf32>
    %139 = math.tanh %138 : vector<2x128xf32>
    %140 = arith.mulf %16, %139 : vector<2x128xf32>
    %141 = arith.addf %140, %19 : vector<2x128xf32>
    %142 = vector.extract_strided_slice %141 {offsets = [0, 0], sizes = [2, 32], strides = [1, 1]} : vector<2x128xf32> to vector<2x32xf32>
    %143 = vector.extract_strided_slice %141 {offsets = [0, 32], sizes = [2, 32], strides = [1, 1]} : vector<2x128xf32> to vector<2x32xf32>
    %144 = vector.extract_strided_slice %141 {offsets = [0, 64], sizes = [2, 32], strides = [1, 1]} : vector<2x128xf32> to vector<2x32xf32>
    %145 = vector.extract_strided_slice %141 {offsets = [0, 96], sizes = [2, 32], strides = [1, 1]} : vector<2x128xf32> to vector<2x32xf32>
    %146 = arith.mulf %143, %131 : vector<2x32xf32>
    %147 = arith.mulf %142, %144 : vector<2x32xf32>
    %148 = arith.addf %146, %147 : vector<2x32xf32>
    %149 = math.tanh %148 : vector<2x32xf32>
    %150 = arith.mulf %145, %149 : vector<2x32xf32>
    %c12 = arith.constant 12 : index
    %c0_36 = arith.constant 0 : index
    %151 = vector.load %arg7[%c12, %c0_36] : memref<16x32xf32, #tpu.memory_space<vmem>>, vector<2x32xf32>
    tpu.vector_store %arg7[%c12, %c0_36], %150 {strides = array<i32>} : memref<16x32xf32, #tpu.memory_space<vmem>>, vector<2x32xf32>,
    %152 = vector.extract_strided_slice %32 {offsets = [14, 0], sizes = [2, 128], strides = [1, 1]} : vector<16x128xf32> to vector<2x128xf32>
    %cst_37 = arith.constant dense<0.000000e+00> : vector<2x128xf32>
    %153 = tpu.matmul %150, %27, %cst_37 {dimension_numbers = #tpu.dot_dimension_numbers<[1], [0], [0], [1], [0, 0, 1, 1], [], []>} : vector<2x32xf32>, vector<32x128xf32>, vector<2x128xf32> -> vector<2x128xf32>
    %154 = arith.addf %152, %153 : vector<2x128xf32>
    %155 = arith.mulf %16, %154 : vector<2x128xf32>
    %156 = math.tanh %155 : vector<2x128xf32>
    %157 = arith.mulf %16, %156 : vector<2x128xf32>
    %158 = arith.addf %157, %19 : vector<2x128xf32>
    %159 = vector.extract_strided_slice %158 {offsets = [0, 0], sizes = [2, 32], strides = [1, 1]} : vector<2x128xf32> to vector<2x32xf32>
    %160 = vector.extract_strided_slice %158 {offsets = [0, 32], sizes = [2, 32], strides = [1, 1]} : vector<2x128xf32> to vector<2x32xf32>
    %161 = vector.extract_strided_slice %158 {offsets = [0, 64], sizes = [2, 32], strides = [1, 1]} : vector<2x128xf32> to vector<2x32xf32>
    %162 = vector.extract_strided_slice %158 {offsets = [0, 96], sizes = [2, 32], strides = [1, 1]} : vector<2x128xf32> to vector<2x32xf32>
    %163 = arith.mulf %160, %148 : vector<2x32xf32>
    %164 = arith.mulf %159, %161 : vector<2x32xf32>
    %165 = arith.addf %163, %164 : vector<2x32xf32>
    %166 = math.tanh %165 : vector<2x32xf32>
    %167 = arith.mulf %162, %166 : vector<2x32xf32>
    %c14 = arith.constant 14 : index
    %c0_38 = arith.constant 0 : index
    %168 = vector.load %arg7[%c14, %c0_38] : memref<16x32xf32, #tpu.memory_space<vmem>>, vector<2x32xf32>
    tpu.vector_store %arg7[%c14, %c0_38], %167 {strides = array<i32>} : memref<16x32xf32, #tpu.memory_space<vmem>>, vector<2x32xf32>,
    %c0_39 = arith.constant 0 : index
    %c0_40 = arith.constant 0 : index
    %c0_41 = arith.constant 0 : index
    %c0_42 = arith.constant 0 : index
    %169 = vector.load %arg6[%c0_39, %c0_40, %c0_41, %c0_42] : memref<2x2x2x32xf32, #tpu.memory_space<vmem>>, vector<1x1x2x32xf32>
    %170 = vector.shape_cast %169 : vector<1x1x2x32xf32> to vector<2x32xf32>
    %171 = vector.shape_cast %167 : vector<2x32xf32> to vector<1x1x2x32xf32>
    tpu.vector_store %arg6[%c0_39, %c0_40, %c0_41, %c0_42], %171 {strides = array<i32>} : memref<2x2x2x32xf32, #tpu.memory_space<vmem>>, vector<1x1x2x32xf32>,
    %c1_43 = arith.constant 1 : index
    %c0_44 = arith.constant 0 : index
    %c0_45 = arith.constant 0 : index
    %c0_46 = arith.constant 0 : index
    %172 = vector.load %arg6[%c1_43, %c0_44, %c0_45, %c0_46] : memref<2x2x2x32xf32, #tpu.memory_space<vmem>>, vector<1x1x2x32xf32>
    %173 = vector.shape_cast %172 : vector<1x1x2x32xf32> to vector<2x32xf32>
    %174 = vector.shape_cast %165 : vector<2x32xf32> to vector<1x1x2x32xf32>
    tpu.vector_store %arg6[%c1_43, %c0_44, %c0_45, %c0_46], %174 {strides = array<i32>} : memref<2x2x2x32xf32, #tpu.memory_space<vmem>>, vector<1x1x2x32xf32>,
    %c0_47 = arith.constant 0 : index
    %c0_48 = arith.constant 0 : index
    %175 = vector.load %arg7[%c0_47, %c0_48] : memref<16x32xf32, #tpu.memory_space<vmem>>, vector<16x32xf32>
    %c0_49 = arith.constant 0 : index
    %c1_50 = arith.constant 1 : index
    %c0_51 = arith.constant 0 : index
    %c0_52 = arith.constant 0 : index
    %176 = vector.load %arg4[%c0_49, %c1_50, %c0_51, %c0_52] : memref<2x2x2x32xf32, #tpu.memory_space<vmem>>, vector<1x1x2x32xf32>
    %177 = vector.shape_cast %176 : vector<1x1x2x32xf32> to vector<2x32xf32>
    %c1_53 = arith.constant 1 : index
    %c1_54 = arith.constant 1 : index
    %c0_55 = arith.constant 0 : index
    %c0_56 = arith.constant 0 : index
    %178 = vector.load %arg4[%c1_53, %c1_54, %c0_55, %c0_56] : memref<2x2x2x32xf32, #tpu.memory_space<vmem>>, vector<1x1x2x32xf32>
    %179 = vector.shape_cast %178 : vector<1x1x2x32xf32> to vector<2x32xf32>
    %c1_57 = arith.constant 1 : index
    %c0_58 = arith.constant 0 : index
    %c0_59 = arith.constant 0 : index
    %180 = vector.load %arg2[%c1_57, %c0_58, %c0_59] : memref<2x72x128xf32, #tpu.memory_space<vmem>>, vector<1x32x128xf32>
    %181 = vector.shape_cast %180 : vector<1x32x128xf32> to vector<32x128xf32>
    %c1_60 = arith.constant 1 : index
    %c32_61 = arith.constant 32 : index
    %c0_62 = arith.constant 0 : index
    %182 = vector.load %arg2[%c1_60, %c32_61, %c0_62] : memref<2x72x128xf32, #tpu.memory_space<vmem>>, vector<1x32x128xf32>
    %183 = vector.shape_cast %182 : vector<1x32x128xf32> to vector<32x128xf32>
    %c1_63 = arith.constant 1 : index
    %c64_64 = arith.constant 64 : index
    %c0_65 = arith.constant 0 : index
    %184 = vector.load %arg2[%c1_63, %c64_64, %c0_65] : memref<2x72x128xf32, #tpu.memory_space<vmem>>, vector<1x1x128xf32>
    %185 = vector.shape_cast %184 : vector<1x1x128xf32> to vector<1x128xf32>
    %cst_66 = arith.constant dense<0.000000e+00> : vector<16x128xf32>
    %186 = tpu.matmul %175, %181, %cst_66 {dimension_numbers = #tpu.dot_dimension_numbers<[1], [0], [0], [1], [0, 0, 1, 1], [], []>} : vector<16x32xf32>, vector<32x128xf32>, vector<16x128xf32> -> vector<16x128xf32>
    %187 = vector.broadcast %185 : vector<1x128xf32> to vector<16x128xf32>
    %188 = arith.addf %186, %187 : vector<16x128xf32>
    %189 = vector.extract_strided_slice %188 {offsets = [0, 0], sizes = [2, 128], strides = [1, 1]} : vector<16x128xf32> to vector<2x128xf32>
    %cst_67 = arith.constant dense<0.000000e+00> : vector<2x128xf32>
    %190 = tpu.matmul %177, %183, %cst_67 {dimension_numbers = #tpu.dot_dimension_numbers<[1], [0], [0], [1], [0, 0, 1, 1], [], []>} : vector<2x32xf32>, vector<32x128xf32>, vector<2x128xf32> -> vector<2x128xf32>
    %191 = arith.addf %189, %190 : vector<2x128xf32>
    %192 = arith.mulf %16, %191 : vector<2x128xf32>
    %193 = math.tanh %192 : vector<2x128xf32>
    %194 = arith.mulf %16, %193 : vector<2x128xf32>
    %195 = arith.addf %194, %19 : vector<2x128xf32>
    %196 = vector.extract_strided_slice %195 {offsets = [0, 0], sizes = [2, 32], strides = [1, 1]} : vector<2x128xf32> to vector<2x32xf32>
    %197 = vector.extract_strided_slice %195 {offsets = [0, 32], sizes = [2, 32], strides = [1, 1]} : vector<2x128xf32> to vector<2x32xf32>
    %198 = vector.extract_strided_slice %195 {offsets = [0, 64], sizes = [2, 32], strides = [1, 1]} : vector<2x128xf32> to vector<2x32xf32>
    %199 = vector.extract_strided_slice %195 {offsets = [0, 96], sizes = [2, 32], strides = [1, 1]} : vector<2x128xf32> to vector<2x32xf32>
    %200 = arith.mulf %197, %179 : vector<2x32xf32>
    %201 = arith.mulf %196, %198 : vector<2x32xf32>
    %202 = arith.addf %200, %201 : vector<2x32xf32>
    %203 = math.tanh %202 : vector<2x32xf32>
    %204 = arith.mulf %199, %203 : vector<2x32xf32>
    %c0_68 = arith.constant 0 : index
    %c0_69 = arith.constant 0 : index
    %205 = vector.load %arg8[%c0_68, %c0_69] : memref<16x32xf32, #tpu.memory_space<vmem>>, vector<2x32xf32>
    tpu.vector_store %arg8[%c0_68, %c0_69], %204 {strides = array<i32>} : memref<16x32xf32, #tpu.memory_space<vmem>>, vector<2x32xf32>,
    %206 = vector.extract_strided_slice %188 {offsets = [2, 0], sizes = [2, 128], strides = [1, 1]} : vector<16x128xf32> to vector<2x128xf32>
    %cst_70 = arith.constant dense<0.000000e+00> : vector<2x128xf32>
    %207 = tpu.matmul %204, %183, %cst_70 {dimension_numbers = #tpu.dot_dimension_numbers<[1], [0], [0], [1], [0, 0, 1, 1], [], []>} : vector<2x32xf32>, vector<32x128xf32>, vector<2x128xf32> -> vector<2x128xf32>
    %208 = arith.addf %206, %207 : vector<2x128xf32>
    %209 = arith.mulf %16, %208 : vector<2x128xf32>
    %210 = math.tanh %209 : vector<2x128xf32>
    %211 = arith.mulf %16, %210 : vector<2x128xf32>
    %212 = arith.addf %211, %19 : vector<2x128xf32>
    %213 = vector.extract_strided_slice %212 {offsets = [0, 0], sizes = [2, 32], strides = [1, 1]} : vector<2x128xf32> to vector<2x32xf32>
    %214 = vector.extract_strided_slice %212 {offsets = [0, 32], sizes = [2, 32], strides = [1, 1]} : vector<2x128xf32> to vector<2x32xf32>
    %215 = vector.extract_strided_slice %212 {offsets = [0, 64], sizes = [2, 32], strides = [1, 1]} : vector<2x128xf32> to vector<2x32xf32>
    %216 = vector.extract_strided_slice %212 {offsets = [0, 96], sizes = [2, 32], strides = [1, 1]} : vector<2x128xf32> to vector<2x32xf32>
    %217 = arith.mulf %214, %202 : vector<2x32xf32>
    %218 = arith.mulf %213, %215 : vector<2x32xf32>
    %219 = arith.addf %217, %218 : vector<2x32xf32>
    %220 = math.tanh %219 : vector<2x32xf32>
    %221 = arith.mulf %216, %220 : vector<2x32xf32>
    %c2_71 = arith.constant 2 : index
    %c0_72 = arith.constant 0 : index
    %222 = vector.load %arg8[%c2_71, %c0_72] : memref<16x32xf32, #tpu.memory_space<vmem>>, vector<2x32xf32>
    tpu.vector_store %arg8[%c2_71, %c0_72], %221 {strides = array<i32>} : memref<16x32xf32, #tpu.memory_space<vmem>>, vector<2x32xf32>,
    %223 = vector.extract_strided_slice %188 {offsets = [4, 0], sizes = [2, 128], strides = [1, 1]} : vector<16x128xf32> to vector<2x128xf32>
    %cst_73 = arith.constant dense<0.000000e+00> : vector<2x128xf32>
    %224 = tpu.matmul %221, %183, %cst_73 {dimension_numbers = #tpu.dot_dimension_numbers<[1], [0], [0], [1], [0, 0, 1, 1], [], []>} : vector<2x32xf32>, vector<32x128xf32>, vector<2x128xf32> -> vector<2x128xf32>
    %225 = arith.addf %223, %224 : vector<2x128xf32>
    %226 = arith.mulf %16, %225 : vector<2x128xf32>
    %227 = math.tanh %226 : vector<2x128xf32>
    %228 = arith.mulf %16, %227 : vector<2x128xf32>
    %229 = arith.addf %228, %19 : vector<2x128xf32>
    %230 = vector.extract_strided_slice %229 {offsets = [0, 0], sizes = [2, 32], strides = [1, 1]} : vector<2x128xf32> to vector<2x32xf32>
    %231 = vector.extract_strided_slice %229 {offsets = [0, 32], sizes = [2, 32], strides = [1, 1]} : vector<2x128xf32> to vector<2x32xf32>
    %232 = vector.extract_strided_slice %229 {offsets = [0, 64], sizes = [2, 32], strides = [1, 1]} : vector<2x128xf32> to vector<2x32xf32>
    %233 = vector.extract_strided_slice %229 {offsets = [0, 96], sizes = [2, 32], strides = [1, 1]} : vector<2x128xf32> to vector<2x32xf32>
    %234 = arith.mulf %231, %219 : vector<2x32xf32>
    %235 = arith.mulf %230, %232 : vector<2x32xf32>
    %236 = arith.addf %234, %235 : vector<2x32xf32>
    %237 = math.tanh %236 : vector<2x32xf32>
    %238 = arith.mulf %233, %237 : vector<2x32xf32>
    %c4_74 = arith.constant 4 : index
    %c0_75 = arith.constant 0 : index
    %239 = vector.load %arg8[%c4_74, %c0_75] : memref<16x32xf32, #tpu.memory_space<vmem>>, vector<2x32xf32>
    tpu.vector_store %arg8[%c4_74, %c0_75], %238 {strides = array<i32>} : memref<16x32xf32, #tpu.memory_space<vmem>>, vector<2x32xf32>,
    %240 = vector.extract_strided_slice %188 {offsets = [6, 0], sizes = [2, 128], strides = [1, 1]} : vector<16x128xf32> to vector<2x128xf32>
    %cst_76 = arith.constant dense<0.000000e+00> : vector<2x128xf32>
    %241 = tpu.matmul %238, %183, %cst_76 {dimension_numbers = #tpu.dot_dimension_numbers<[1], [0], [0], [1], [0, 0, 1, 1], [], []>} : vector<2x32xf32>, vector<32x128xf32>, vector<2x128xf32> -> vector<2x128xf32>
    %242 = arith.addf %240, %241 : vector<2x128xf32>
    %243 = arith.mulf %16, %242 : vector<2x128xf32>
    %244 = math.tanh %243 : vector<2x128xf32>
    %245 = arith.mulf %16, %244 : vector<2x128xf32>
    %246 = arith.addf %245, %19 : vector<2x128xf32>
    %247 = vector.extract_strided_slice %246 {offsets = [0, 0], sizes = [2, 32], strides = [1, 1]} : vector<2x128xf32> to vector<2x32xf32>
    %248 = vector.extract_strided_slice %246 {offsets = [0, 32], sizes = [2, 32], strides = [1, 1]} : vector<2x128xf32> to vector<2x32xf32>
    %249 = vector.extract_strided_slice %246 {offsets = [0, 64], sizes = [2, 32], strides = [1, 1]} : vector<2x128xf32> to vector<2x32xf32>
    %250 = vector.extract_strided_slice %246 {offsets = [0, 96], sizes = [2, 32], strides = [1, 1]} : vector<2x128xf32> to vector<2x32xf32>
    %251 = arith.mulf %248, %236 : vector<2x32xf32>
    %252 = arith.mulf %247, %249 : vector<2x32xf32>
    %253 = arith.addf %251, %252 : vector<2x32xf32>
    %254 = math.tanh %253 : vector<2x32xf32>
    %255 = arith.mulf %250, %254 : vector<2x32xf32>
    %c6_77 = arith.constant 6 : index
    %c0_78 = arith.constant 0 : index
    %256 = vector.load %arg8[%c6_77, %c0_78] : memref<16x32xf32, #tpu.memory_space<vmem>>, vector<2x32xf32>
    tpu.vector_store %arg8[%c6_77, %c0_78], %255 {strides = array<i32>} : memref<16x32xf32, #tpu.memory_space<vmem>>, vector<2x32xf32>,
    %257 = vector.extract_strided_slice %188 {offsets = [8, 0], sizes = [2, 128], strides = [1, 1]} : vector<16x128xf32> to vector<2x128xf32>
    %cst_79 = arith.constant dense<0.000000e+00> : vector<2x128xf32>
    %258 = tpu.matmul %255, %183, %cst_79 {dimension_numbers = #tpu.dot_dimension_numbers<[1], [0], [0], [1], [0, 0, 1, 1], [], []>} : vector<2x32xf32>, vector<32x128xf32>, vector<2x128xf32> -> vector<2x128xf32>
    %259 = arith.addf %257, %258 : vector<2x128xf32>
    %260 = arith.mulf %16, %259 : vector<2x128xf32>
    %261 = math.tanh %260 : vector<2x128xf32>
    %262 = arith.mulf %16, %261 : vector<2x128xf32>
    %263 = arith.addf %262, %19 : vector<2x128xf32>
    %264 = vector.extract_strided_slice %263 {offsets = [0, 0], sizes = [2, 32], strides = [1, 1]} : vector<2x128xf32> to vector<2x32xf32>
    %265 = vector.extract_strided_slice %263 {offsets = [0, 32], sizes = [2, 32], strides = [1, 1]} : vector<2x128xf32> to vector<2x32xf32>
    %266 = vector.extract_strided_slice %263 {offsets = [0, 64], sizes = [2, 32], strides = [1, 1]} : vector<2x128xf32> to vector<2x32xf32>
    %267 = vector.extract_strided_slice %263 {offsets = [0, 96], sizes = [2, 32], strides = [1, 1]} : vector<2x128xf32> to vector<2x32xf32>
    %268 = arith.mulf %265, %253 : vector<2x32xf32>
    %269 = arith.mulf %264, %266 : vector<2x32xf32>
    %270 = arith.addf %268, %269 : vector<2x32xf32>
    %271 = math.tanh %270 : vector<2x32xf32>
    %272 = arith.mulf %267, %271 : vector<2x32xf32>
    %c8_80 = arith.constant 8 : index
    %c0_81 = arith.constant 0 : index
    %273 = vector.load %arg8[%c8_80, %c0_81] : memref<16x32xf32, #tpu.memory_space<vmem>>, vector<2x32xf32>
    tpu.vector_store %arg8[%c8_80, %c0_81], %272 {strides = array<i32>} : memref<16x32xf32, #tpu.memory_space<vmem>>, vector<2x32xf32>,
    %274 = vector.extract_strided_slice %188 {offsets = [10, 0], sizes = [2, 128], strides = [1, 1]} : vector<16x128xf32> to vector<2x128xf32>
    %cst_82 = arith.constant dense<0.000000e+00> : vector<2x128xf32>
    %275 = tpu.matmul %272, %183, %cst_82 {dimension_numbers = #tpu.dot_dimension_numbers<[1], [0], [0], [1], [0, 0, 1, 1], [], []>} : vector<2x32xf32>, vector<32x128xf32>, vector<2x128xf32> -> vector<2x128xf32>
    %276 = arith.addf %274, %275 : vector<2x128xf32>
    %277 = arith.mulf %16, %276 : vector<2x128xf32>
    %278 = math.tanh %277 : vector<2x128xf32>
    %279 = arith.mulf %16, %278 : vector<2x128xf32>
    %280 = arith.addf %279, %19 : vector<2x128xf32>
    %281 = vector.extract_strided_slice %280 {offsets = [0, 0], sizes = [2, 32], strides = [1, 1]} : vector<2x128xf32> to vector<2x32xf32>
    %282 = vector.extract_strided_slice %280 {offsets = [0, 32], sizes = [2, 32], strides = [1, 1]} : vector<2x128xf32> to vector<2x32xf32>
    %283 = vector.extract_strided_slice %280 {offsets = [0, 64], sizes = [2, 32], strides = [1, 1]} : vector<2x128xf32> to vector<2x32xf32>
    %284 = vector.extract_strided_slice %280 {offsets = [0, 96], sizes = [2, 32], strides = [1, 1]} : vector<2x128xf32> to vector<2x32xf32>
    %285 = arith.mulf %282, %270 : vector<2x32xf32>
    %286 = arith.mulf %281, %283 : vector<2x32xf32>
    %287 = arith.addf %285, %286 : vector<2x32xf32>
    %288 = math.tanh %287 : vector<2x32xf32>
    %289 = arith.mulf %284, %288 : vector<2x32xf32>
    %c10_83 = arith.constant 10 : index
    %c0_84 = arith.constant 0 : index
    %290 = vector.load %arg8[%c10_83, %c0_84] : memref<16x32xf32, #tpu.memory_space<vmem>>, vector<2x32xf32>
    tpu.vector_store %arg8[%c10_83, %c0_84], %289 {strides = array<i32>} : memref<16x32xf32, #tpu.memory_space<vmem>>, vector<2x32xf32>,
    %291 = vector.extract_strided_slice %188 {offsets = [12, 0], sizes = [2, 128], strides = [1, 1]} : vector<16x128xf32> to vector<2x128xf32>
    %cst_85 = arith.constant dense<0.000000e+00> : vector<2x128xf32>
    %292 = tpu.matmul %289, %183, %cst_85 {dimension_numbers = #tpu.dot_dimension_numbers<[1], [0], [0], [1], [0, 0, 1, 1], [], []>} : vector<2x32xf32>, vector<32x128xf32>, vector<2x128xf32> -> vector<2x128xf32>
    %293 = arith.addf %291, %292 : vector<2x128xf32>
    %294 = arith.mulf %16, %293 : vector<2x128xf32>
    %295 = math.tanh %294 : vector<2x128xf32>
    %296 = arith.mulf %16, %295 : vector<2x128xf32>
    %297 = arith.addf %296, %19 : vector<2x128xf32>
    %298 = vector.extract_strided_slice %297 {offsets = [0, 0], sizes = [2, 32], strides = [1, 1]} : vector<2x128xf32> to vector<2x32xf32>
    %299 = vector.extract_strided_slice %297 {offsets = [0, 32], sizes = [2, 32], strides = [1, 1]} : vector<2x128xf32> to vector<2x32xf32>
    %300 = vector.extract_strided_slice %297 {offsets = [0, 64], sizes = [2, 32], strides = [1, 1]} : vector<2x128xf32> to vector<2x32xf32>
    %301 = vector.extract_strided_slice %297 {offsets = [0, 96], sizes = [2, 32], strides = [1, 1]} : vector<2x128xf32> to vector<2x32xf32>
    %302 = arith.mulf %299, %287 : vector<2x32xf32>
    %303 = arith.mulf %298, %300 : vector<2x32xf32>
    %304 = arith.addf %302, %303 : vector<2x32xf32>
    %305 = math.tanh %304 : vector<2x32xf32>
    %306 = arith.mulf %301, %305 : vector<2x32xf32>
    %c12_86 = arith.constant 12 : index
    %c0_87 = arith.constant 0 : index
    %307 = vector.load %arg8[%c12_86, %c0_87] : memref<16x32xf32, #tpu.memory_space<vmem>>, vector<2x32xf32>
    tpu.vector_store %arg8[%c12_86, %c0_87], %306 {strides = array<i32>} : memref<16x32xf32, #tpu.memory_space<vmem>>, vector<2x32xf32>,
    %308 = vector.extract_strided_slice %188 {offsets = [14, 0], sizes = [2, 128], strides = [1, 1]} : vector<16x128xf32> to vector<2x128xf32>
    %cst_88 = arith.constant dense<0.000000e+00> : vector<2x128xf32>
    %309 = tpu.matmul %306, %183, %cst_88 {dimension_numbers = #tpu.dot_dimension_numbers<[1], [0], [0], [1], [0, 0, 1, 1], [], []>} : vector<2x32xf32>, vector<32x128xf32>, vector<2x128xf32> -> vector<2x128xf32>
    %310 = arith.addf %308, %309 : vector<2x128xf32>
    %311 = arith.mulf %16, %310 : vector<2x128xf32>
    %312 = math.tanh %311 : vector<2x128xf32>
    %313 = arith.mulf %16, %312 : vector<2x128xf32>
    %314 = arith.addf %313, %19 : vector<2x128xf32>
    %315 = vector.extract_strided_slice %314 {offsets = [0, 0], sizes = [2, 32], strides = [1, 1]} : vector<2x128xf32> to vector<2x32xf32>
    %316 = vector.extract_strided_slice %314 {offsets = [0, 32], sizes = [2, 32], strides = [1, 1]} : vector<2x128xf32> to vector<2x32xf32>
    %317 = vector.extract_strided_slice %314 {offsets = [0, 64], sizes = [2, 32], strides = [1, 1]} : vector<2x128xf32> to vector<2x32xf32>
    %318 = vector.extract_strided_slice %314 {offsets = [0, 96], sizes = [2, 32], strides = [1, 1]} : vector<2x128xf32> to vector<2x32xf32>
    %319 = arith.mulf %316, %304 : vector<2x32xf32>
    %320 = arith.mulf %315, %317 : vector<2x32xf32>
    %321 = arith.addf %319, %320 : vector<2x32xf32>
    %322 = math.tanh %321 : vector<2x32xf32>
    %323 = arith.mulf %318, %322 : vector<2x32xf32>
    %c14_89 = arith.constant 14 : index
    %c0_90 = arith.constant 0 : index
    %324 = vector.load %arg8[%c14_89, %c0_90] : memref<16x32xf32, #tpu.memory_space<vmem>>, vector<2x32xf32>
    tpu.vector_store %arg8[%c14_89, %c0_90], %323 {strides = array<i32>} : memref<16x32xf32, #tpu.memory_space<vmem>>, vector<2x32xf32>,
    %c0_91 = arith.constant 0 : index
    %c1_92 = arith.constant 1 : index
    %c0_93 = arith.constant 0 : index
    %c0_94 = arith.constant 0 : index
    %325 = vector.load %arg6[%c0_91, %c1_92, %c0_93, %c0_94] : memref<2x2x2x32xf32, #tpu.memory_space<vmem>>, vector<1x1x2x32xf32>
    %326 = vector.shape_cast %325 : vector<1x1x2x32xf32> to vector<2x32xf32>
    %327 = vector.shape_cast %323 : vector<2x32xf32> to vector<1x1x2x32xf32>
    tpu.vector_store %arg6[%c0_91, %c1_92, %c0_93, %c0_94], %327 {strides = array<i32>} : memref<2x2x2x32xf32, #tpu.memory_space<vmem>>, vector<1x1x2x32xf32>,
    %c1_95 = arith.constant 1 : index
    %c1_96 = arith.constant 1 : index
    %c0_97 = arith.constant 0 : index
    %c0_98 = arith.constant 0 : index
    %328 = vector.load %arg6[%c1_95, %c1_96, %c0_97, %c0_98] : memref<2x2x2x32xf32, #tpu.memory_space<vmem>>, vector<1x1x2x32xf32>
    %329 = vector.shape_cast %328 : vector<1x1x2x32xf32> to vector<2x32xf32>
    %330 = vector.shape_cast %321 : vector<2x32xf32> to vector<1x1x2x32xf32>
    tpu.vector_store %arg6[%c1_95, %c1_96, %c0_97, %c0_98], %330 {strides = array<i32>} : memref<2x2x2x32xf32, #tpu.memory_space<vmem>>, vector<1x1x2x32xf32>,
    %c0_99 = arith.constant 0 : index
    %c0_100 = arith.constant 0 : index
    %331 = vector.load %arg8[%c0_99, %c0_100] : memref<16x32xf32, #tpu.memory_space<vmem>>, vector<16x32xf32>
    %c0_101 = arith.constant 0 : index
    %c0_102 = arith.constant 0 : index
    %332 = vector.load %arg3[%c0_101, %c0_102] : memref<176x128xf32, #tpu.memory_space<vmem>>, vector<32x128xf32>
    %c32_103 = arith.constant 32 : index
    %c0_104 = arith.constant 0 : index
    %333 = vector.load %arg3[%c32_103, %c0_104] : memref<176x128xf32, #tpu.memory_space<vmem>>, vector<1x128xf32>
    %c40 = arith.constant 40 : index
    %c0_105 = arith.constant 0 : index
    %334 = vector.load %arg3[%c40, %c0_105] : memref<176x128xf32, #tpu.memory_space<vmem>>, vector<128x128xf32>
    %c168 = arith.constant 168 : index
    %c0_106 = arith.constant 0 : index
    %335 = vector.load %arg3[%c168, %c0_106] : memref<176x128xf32, #tpu.memory_space<vmem>>, vector<1x128xf32>
    %cst_107 = arith.constant dense<0.000000e+00> : vector<16x128xf32>
    %336 = tpu.matmul %331, %332, %cst_107 {dimension_numbers = #tpu.dot_dimension_numbers<[1], [0], [0], [1], [0, 0, 1, 1], [], []>} : vector<16x32xf32>, vector<32x128xf32>, vector<16x128xf32> -> vector<16x128xf32>
    %337 = vector.broadcast %333 : vector<1x128xf32> to vector<16x128xf32>
    %338 = arith.addf %336, %337 : vector<16x128xf32>
    %339 = math.tanh %338 : vector<16x128xf32>
    %cst_108 = arith.constant dense<0.000000e+00> : vector<16x128xf32>
    %340 = tpu.matmul %339, %334, %cst_108 {dimension_numbers = #tpu.dot_dimension_numbers<[1], [0], [0], [1], [0, 0, 1, 1], [], []>} : vector<16x128xf32>, vector<128x128xf32>, vector<16x128xf32> -> vector<16x128xf32>
    %341 = vector.broadcast %335 : vector<1x128xf32> to vector<16x128xf32>
    %342 = arith.addf %340, %341 : vector<16x128xf32>
    %c0_109 = arith.constant 0 : index
    %c0_110 = arith.constant 0 : index
    %343 = vector.load %arg5[%c0_109, %c0_110] : memref<16x128xf32, #tpu.memory_space<vmem>>, vector<16x128xf32>
    tpu.vector_store %arg5[%c0_109, %c0_110], %342 {strides = array<i32>} : memref<16x128xf32, #tpu.memory_space<vmem>>, vector<16x128xf32>,
    return
  }
}

</mosaic_0001>

<bundles_post_ra>
// kernel: baseline_lm_forward.1
= control target key start
LH: loop header
LB: loop body
LE: loop exit
PB: predicated region body
PF: predicated region fallthrough
CT: control target
= control target key end

     0   :  { %12 = vsyncpa [#allocation5], 0  ;;  %s1819_s0 = inlined_call_operand.vmem [shape: s32[16,1], index: 0, kind: input, shape index: {}]   ;;  %s1820_s1 = inlined_call_operand.vmem [shape: f32[64,32], index: 1, kind: input, shape index: {}]   ;;  %s1821_s2 = inlined_call_operand.hbm [shape: f32[2,72,128], index: 2, kind: input, shape index: {}]   ;;  %s1822_s3 = inlined_call_operand.hbm [shape: f32[176,128], index: 3, kind: input, shape index: {}]   ;;  %s1823_s4 = inlined_call_operand.vmem [shape: f32[2,2,2,32], index: 4, kind: input, shape index: {}]   ;;  %s1824_s5 = inlined_call_operand.vmem [shape: f32[16,128], index: 5, kind: output, shape index: {0}]   ;;  %s1825_s6 = inlined_call_operand.vmem [shape: f32[2,2,2,32], index: 6, kind: output, shape index: {1}]  }
   0x1   :  { %s22_s23 = sshll.u32 %s1821_s2, 4  ;;  %s23_s23 = int_to_ptr.hbm [resolvable:$true] %s22_s23 }
   0x2   :  { %13 = vsyncpa [#allocation7], 0  ;;  %s1390_s24 = smov [#allocation4]   ;;  %s35_s28 = sshll.u32 %s1822_s3, 4  ;;  %s36_s28 = int_to_ptr.hbm [resolvable:$true] %s35_s28 }
   0x3   :  { %s24_s25 = sshll.u32 %s1390_s24, 4  ;;  %s1391_s29 = smov 128   ;;  %s25_s25 = int_to_ptr.vmem [resolvable:$true] %s24_s25 }
   0x4   :  { %s1392_s30 = smov 8   ;;  %s1393_s7 = smov [#allocation6]  }
   0x5   :  { %30 = dma.hbm_to_vmem [thread:$0]  %s23_s23, 2304, %s25_s25, [#allocation5], %s1391_s29, %s1391_s29, %s1392_s30  }
   0x6   :  { %s37_s8 = sshll.u32 %s1393_s7, 4  ;;  %s38_s8 = int_to_ptr.vmem [resolvable:$true] %s37_s8 }
   0x7   :  { %43 = dma.hbm_to_vmem [thread:$0]  %s36_s28, 2816, %s38_s8, [#allocation7], %s1391_s29, %s1391_s29, %s1392_s30  }
   0x8   :  { %1386 = dma.done.wait [#allocation5], 2304  }
   0x9   :  { %1387 = vsyncadd [#allocation5], 4294964992 }
   0xa   :  { %1388 = dma.done.wait [#allocation7], 2816  }
   0xb   :  { %1389 = vsyncadd [#allocation7], 4294964480  ;;  %v1394_v0 = vmov 0   ;;  %v54_v1 = vld [vmem:[%s1819_s0] sm:$0xff]  ;;  %v77_v2 = vld [vmem:[%s1820_s1 + $0x38] sm:$0xff]  ;;  %v56_v19 = vlaneseq  ;;  %vm78_vm0 = vcmask 523264  }
   0xc   :  { %1265 = vset.pattern.permute.xlu0 %v1394_v0  ;;  %93 = vmatpush.msra.mxu1 %v77_v2  ;;  %v76_v3 = vld [vmem:[%s1820_s1 + $0x30] sm:$0xff]  ;;  %v75_v4 = vld [vmem:[%s1820_s1 + $0x28] sm:$0xff]  ;;  %v74_v5 = vld [vmem:[%s1820_s1 + $0x20] sm:$0xff]  ;;  %v1395_v22 = vmov 0.0   ;;  %vm126_vm3 = vcmask 261120   ;;  %v1396_v33 = vmov 0.5  }
   0xd   :  { %59 = vperm.xlu0 %1265, %v54_v1   ;;  %1247 = vmatpush.msra.mxu2 %v77_v2  ;;  %v55_v6 = vld [vmem:[%s1819_s0 + $0x8] sm:$0xff]  ;;  %v73_v7 = vld [vmem:[%s1820_s1 + $0x18] sm:$0xff]  ;;  %v72_v8 = vld [vmem:[%s1820_s1 + $0x10] sm:$0xff]  ;;  %v57_v20 = vand.u32 127, %v56_v19  ;;  %s1397_s27 = smov 64   ;;  %s1398_s30 = smov 32  }
   0xe   :  { %94 = vmatpush.msra.mxu1 %v76_v3  ;;  %v71_v9 = vld [vmem:[%s1820_s1 + $0x8] sm:$0xff]  ;;  %v70_v10 = vld [vmem:[%s1820_s1] sm:$0xff]  ;;  %v1471_v11 = vld [vmem:[#allocation4 + $0x38] sm:$0xff]  ;;  %vm209_vm7 = vcmask 254976   ;;  %vm265_vm8 = vcmask 257026   ;;  %vm324_vm9 = vcmask 259076  }
   0xf   :  { %1248 = vmatpush.msra.mxu2 %v76_v3  ;;  %v1473_v12 = vld [vmem:[#allocation4 + $0x30] sm:$0xff]  ;;  %v119_v13 = vld [vmem:[#allocation4 + $0x18] sm:$0xff]  ;;  %v1476_v15 = vld [vmem:[#allocation4 + $0x28] sm:$0xff]  ;;  %225 = vmatpush.msra.mxu3 %v1471_v11  ;;  %vm108_vm4 = vcmp.ge.s32.totalorder %v57_v20, 64  ;;  %vm109_vm5 = vcmp.lt.s32.totalorder %v57_v20, 96  ;;  %vm383_vm10 = vcmask 261126  }
  0x10   :  { %95 = vmatpush.msra.mxu1 %v75_v4  ;;  %v118_v14 = vld [vmem:[#allocation4 + $0x10] sm:$0xff]  ;;  %v117_v16 = vld [vmem:[#allocation4 + $0x8] sm:$0xff]  ;;  %570 = vmatpush.msra.mxu0 %v1471_v11  ;;  %v1481_v17 = vld [vmem:[#allocation4 + $0x20] sm:$0xff]  ;;  %s1399_s3 = smov 96  }
  0x11   :  { %1249 = vmatpush.msra.mxu2 %v75_v4  ;;  %226 = vmatpush.msra.mxu3 %v1473_v12  ;;  %v116_v18 = vld [vmem:[#allocation4] sm:$0xff]  ;;  %vm110_vm6 = vmand %vm108_vm4, %vm109_vm5 }
  0x12   :  { %96 = vmatpush.msra.mxu1 %v74_v5  ;;  %571 = vmatpush.msra.mxu0 %v1473_v12  ;;  %v113_v26 = vld [vmem:[%s1823_s4] sm:$0x3]  ;;  %v1518_v34 = vsel %vm110_vm6, 1.0, %v1396_v33  ;;  %v1522_v38 = vsel %vm110_vm6, 0.0, %v1396_v33  ;;  %v1219_v41 = vld [vmem:[%s1823_s4 + $0x4] sm:$0x3] }
  0x13   :  { %1250 = vmatpush.msra.mxu2 %v74_v5  ;;  %227 = vmatpush.msra.mxu3 %v1476_v15  ;;  %v1513_v29 = vld [vmem:[#allocation4 + $0x40] ss:$0 sm:$0xff] }
  0x14   :  { %97 = vmatpush.msra.mxu1 %v73_v7  ;;  %572 = vmatpush.msra.mxu0 %v1476_v15 }
  0x15   :  { %62 = vperm.xlu0 %1265, %v55_v6   ;;  %1251 = vmatpush.msra.mxu2 %v73_v7 }
  0x16   :  { %98 = vmatpush.msra.mxu1 %v72_v8  ;;  %228 = vmatpush.msra.mxu3 %v1481_v17 }
  0x17   :  { %1252 = vmatpush.msra.mxu2 %v72_v8  ;;  %573 = vmatpush.msra.mxu0 %v1481_v17 }
  0x18   :  { %99 = vmatpush.msra.mxu1 %v71_v9  ;;  %343 = vmatpush.msrb.mxu3 %v1471_v11 }
  0x19   :  { %1253 = vmatpush.msra.mxu2 %v71_v9 }
  0x1a   :  { %100 = vmatpush.msra.mxu1 %v70_v10  ;;  %344 = vmatpush.msrb.mxu3 %v1473_v12 }
  0x1b   :  { %1254 = vmatpush.msra.mxu2 %v70_v10 }
  0x1c   :  { %145 = vmatpush.msrb.mxu1 %v119_v13  ;;  %345 = vmatpush.msrb.mxu3 %v1476_v15 }
  0x1d   :  { %171 = vmatpush.msrb.mxu2 %v1471_v11 }
  0x1e   :  { %146 = vmatpush.msrb.mxu1 %v118_v14  ;;  %346 = vmatpush.msrb.mxu3 %v1481_v17 }
  0x1f   :  { %172 = vmatpush.msrb.mxu2 %v1473_v12 }
  0x20   :  { %147 = vmatpush.msrb.mxu1 %v117_v16 }
  0x21   :  { %173 = vmatpush.msrb.mxu2 %v1476_v15 }
  0x22   :  { %148 = vmatpush.msrb.mxu1 %v116_v18 }
  0x23   :  { %174 = vmatpush.msrb.mxu2 %v1481_v17 }
  0x7f   :  { %v60_v21 = vpop.permute.xlu0 %59 }
  0x80   :  { %vm64_vm1 = vcmp.eq.s32.totalorder %v57_v20, %v60_v21 }
  0x81   :  { %v1215_v23 = vsel %vm64_vm1, 1.0, %v1395_v22 }
  0x82   :  { %1217 = vmatmul.msk.f32.vlgmr.msra.gmra.mxu1 %vm78_vm0, %v1215_v23 }
  0x83   :  { %402 = vmatpush.msra.mxu1 %v1471_v11 }
  0x85   :  { %403 = vmatpush.msra.mxu1 %v1473_v12 }
  0x87   :  { %v63_v24 = vpop.permute.xlu0 %62  ;;  %404 = vmatpush.msra.mxu1 %v1476_v15 }
  0x88   :  { %vm65_vm2 = vcmp.eq.s32.totalorder %v57_v20, %v63_v24 }
  0x89   :  { %v1216_v25 = vsel %vm65_vm2, 1.0, %v1395_v22  ;;  %405 = vmatpush.msra.mxu1 %v1481_v17 }
  0x8a   :  { %1218 = vmatmul.msk.f32.vlgmr.msra.gmra.mxu2 %vm78_vm0, %v1216_v25 }
  0x8b   :  { %284 = vmatpush.msra.mxu2 %v1471_v11 }
  0x8d   :  { %285 = vmatpush.msra.mxu2 %v1473_v12 }
  0x8f   :  { %286 = vmatpush.msra.mxu2 %v1476_v15 }
  0x91   :  { %287 = vmatpush.msra.mxu2 %v1481_v17 }
  0x92   :  { %1222 = vmatmul.msk.f32.vlgmr.msrb.gmra.mxu2 %vm126_vm3, %v113_v26 }
  0x93   :  { %454 = vmatpush.msrb.mxu2 %v1471_v11 }
  0x95   :  { %455 = vmatpush.msrb.mxu2 %v1473_v12 }
  0x97   :  { %456 = vmatpush.msrb.mxu2 %v1476_v15 }
  0x99   :  { %457 = vmatpush.msrb.mxu2 %v1481_v17 }
  0xff   :  { %v102_v27 = vpop.f32.mrf.mxu1 }
 0x100   :  { %1220 = vmatmul.msk.f32.vlgmr.msrb.gmra.mxu1 %vm126_vm3, %v102_v27 }
 0x10d   :  { %v105_v28 = vpop.f32.mrf.mxu2 }
 0x10e   :  { %1221 = vmatmul.msk.f32.gmra.mxu1 %vm126_vm3, %v105_v28 }
 0x115   :  { %v176_v31 = vpop.f32.mrf.mxu2 }
 0x17d   :  { %v150_v30 = vpop.f32.mrf.mxu1 }
 0x17e   :  { %v1516_v32 = vadd.f32 %v1513_v29, %v150_v30 }
 0x180   :  { %v179_v35 = vadd.f32 %v176_v31, %v1516_v32 }
 0x182   :  { %v180_v36 = vmul.f32 %v179_v35, %v1518_v34 }
 0x184   :  { %1270 = vtanh.f32 %v180_v36 }
 0x18a   :  { %v1271_v37 = vpop.eup %1270 }
 0x18b   :  { %v182_v39 = vmul.f32 %v1271_v37, %v1518_v34 }
 0x18d   :  { %v183_v40 = vadd.f32 %v182_v39, %v1522_v38 }
 0x18f   :  { %190 = vrot.lane.b32.xlu1 %v183_v40, %s1397_s27 }
 0x197   :  { %185 = vrot.lane.b32.xlu1 %v1219_v41, %s1398_s30 }
 0x201   :  { %v191_v42 = vpop.permute.xlu1 %190 }
 0x202   :  { %v193_v43 = vmul.f32 %v191_v42, %v183_v40 }
 0x204   :  { %195 = vrot.lane.b32.xlu2 %v193_v43, %s1398_s30 }
 0x209   :  { %v186_v44 = vpop.permute.xlu1 %185 }
 0x20a   :  { %v188_v45 = vmul.f32 %v186_v44, %v183_v40 }
 0x25e   :  { %v196_v46 = vpop.permute.xlu2 %195 }
 0x25f   :  { %v198_v47 = vadd.f32 %v196_v46, %v188_v45  ;;  %v153_v45 = vpop.f32.mrf.mxu1 }
 0x260   :  { %v1571_v46 = vadd.f32 %v1513_v29, %v153_v45 }
 0x261   :  { %1272 = vtanh.f32 %v198_v47  ;;  %v242_v61 = vrot.slane %v198_v47, 6 }
 0x267   :  { %v1273_v48 = vpop.eup %1272 }
 0x268   :  { %201 = vrot.lane.b32.xlu2 %v1273_v48, %s1397_s27 }
 0x2c2   :  { %v202_v49 = vpop.permute.xlu2 %201 }
 0x2c3   :  { %v204_v50 = vmul.f32 %v202_v49, %v183_v40 }
 0x2c5   :  { %206 = vrot.lane.b32.xlu0 %v204_v50, %s1398_s30 }
 0x337   :  { %v207_v51 = vpop.permute.xlu0 %206 }
 0x338   :  { %210 = vst.msk [vmem:[#allocation2] sm:$0x3] %vm209_vm7, %v207_v51  ;;  %1223 = vmatmul.msk.f32.vlgmr.msra.gmra.mxu3 %vm126_vm3, %v207_v51 }
 0x339   :  { %512 = vmatpush.msra.mxu3 %v1471_v11 }
 0x33b   :  { %513 = vmatpush.msra.mxu3 %v1473_v12 }
 0x33d   :  { %514 = vmatpush.msra.mxu3 %v1476_v15 }
 0x33f   :  { %515 = vmatpush.msra.mxu3 %v1481_v17 }
 0x3bb   :  { %v230_v52 = vpop.f32.mrf.mxu3 }
 0x3bc   :  { %v234_v53 = vrot.slane %v230_v52, 6 }
 0x3be   :  { %v236_v54 = vadd.f32 %v234_v53, %v1516_v32 }
 0x3c0   :  { %v237_v55 = vmul.f32 %v236_v54, %v1518_v34 }
 0x3c2   :  { %1274 = vtanh.f32 %v237_v55 }
 0x3c8   :  { %v1275_v56 = vpop.eup %1274 }
 0x3c9   :  { %v239_v57 = vmul.f32 %v1275_v56, %v1518_v34 }
 0x3cb   :  { %v240_v58 = vadd.f32 %v239_v57, %v1522_v38 }
 0x3cd   :  { %246 = vrot.lane.b32.xlu1 %v240_v58, %s1397_s27  ;;  %v244_v62 = vmul.f32 %v242_v61, %v240_v58 }
 0x43f   :  { %v247_v59 = vpop.permute.xlu1 %246 }
 0x440   :  { %v249_v60 = vmul.f32 %v247_v59, %v240_v58 }
 0x442   :  { %251 = vrot.lane.b32.xlu2 %v249_v60, %s1398_s30 }
 0x49c   :  { %v252_v63 = vpop.permute.xlu2 %251 }
 0x49d   :  { %v254_v0 = vadd.f32 %v252_v63, %v244_v62  ;;  %v1590_v63 = vld [vmem:[#allocation4 + $0x80] sm:$0xff] }
 0x49e   :  { %790 = vmatpush.msrb.mxu0 %v1590_v63 }
 0x49f   :  { %1276 = vtanh.f32 %v254_v0  ;;  %v301_v15 = vrot.slane %v254_v0, 6  ;;  %v1592_v0 = vld [vmem:[#allocation4 + $0x78] sm:$0xff] }
 0x4a0   :  { %791 = vmatpush.msrb.mxu0 %v1592_v0 }
 0x4a5   :  { %v1277_v1 = vpop.eup %1276 }
 0x4a6   :  { %257 = vrot.lane.b32.xlu0 %v1277_v1, %s1397_s27  ;;  %v628_v1 = vld [vmem:[#allocation4 + $0x60] sm:$0xff] }
 0x4a7   :  { %653 = vmatpush.msrb.mxu1 %v628_v1 }
 0x518   :  { %v258_v2 = vpop.permute.xlu0 %257 }
 0x519   :  { %v1547_v3 = vmul.f32 %v258_v2, %v240_v58  ;;  %v1600_v2 = vld [vmem:[#allocation4 + $0x70] sm:$0xff] }
 0x51a   :  { %792 = vmatpush.msrb.mxu0 %v1600_v2 }
 0x51b   :  { %v267_v4 = vrot.slane %v1547_v3, 2 }
 0x51d   :  { %268 = vrot.lane.b32.xlu1 %v267_v4, %s1398_s30  ;;  %v1603_v4 = vld [vmem:[#allocation4 + $0x68] sm:$0xff] }
 0x51e   :  { %793 = vmatpush.msrb.mxu0 %v1603_v4 }
 0x58f   :  { %v269_v5 = vpop.permute.xlu1 %268 }
 0x590   :  { %1224 = vmatmul.msk.f32.vlgmr.msra.gmra.mxu2 %vm126_vm3, %v269_v5  ;;  %v626_v5 = vld [vmem:[#allocation4 + $0x50] sm:$0xff] }
 0x591   :  { %679 = vmatpush.msra.mxu2 %v1590_v63 }
 0x593   :  { %680 = vmatpush.msra.mxu2 %v1592_v0 }
 0x595   :  { %681 = vmatpush.msra.mxu2 %v1600_v2 }
 0x597   :  { %682 = vmatpush.msra.mxu2 %v1603_v4 }
 0x613   :  { %v289_v6 = vpop.f32.mrf.mxu2 }
 0x614   :  { %v293_v7 = vrot.slane %v289_v6, 4  ;;  %v625_v6 = vld [vmem:[#allocation4 + $0x48] sm:$0xff] }
 0x616   :  { %v295_v8 = vadd.f32 %v293_v7, %v1516_v32 }
 0x618   :  { %v296_v9 = vmul.f32 %v295_v8, %v1518_v34  ;;  %v1231_v8 = vld [vmem:[%s1823_s4 + $0x2] sm:$0x3] }
 0x61a   :  { %1278 = vtanh.f32 %v296_v9 }
 0x620   :  { %v1279_v10 = vpop.eup %1278 }
 0x621   :  { %v298_v11 = vmul.f32 %v1279_v10, %v1518_v34 }
 0x623   :  { %v299_v12 = vadd.f32 %v298_v11, %v1522_v38 }
 0x625   :  { %305 = vrot.lane.b32.xlu2 %v299_v12, %s1397_s27  ;;  %v303_v16 = vmul.f32 %v301_v15, %v299_v12  ;;  %v1632_v15 = vld [vmem:[#allocation4 + $0x88] ss:$0 sm:$0xff] }
 0x67f   :  { %v306_v13 = vpop.permute.xlu2 %305 }
 0x680   :  { %v308_v14 = vmul.f32 %v306_v13, %v299_v12 }
 0x682   :  { %310 = vrot.lane.b32.xlu0 %v308_v14, %s1398_s30 }
 0x6f4   :  { %v311_v17 = vpop.permute.xlu0 %310 }
 0x6f5   :  { %v313_v18 = vadd.f32 %v311_v17, %v303_v16 }
 0x6f7   :  { %1280 = vtanh.f32 %v313_v18  ;;  %v360_v36 = vrot.slane %v313_v18, 6 }
 0x6fd   :  { %v1281_v19 = vpop.eup %1280 }
 0x6fe   :  { %316 = vrot.lane.b32.xlu1 %v1281_v19, %s1397_s27 }
 0x770   :  { %v317_v20 = vpop.permute.xlu1 %316 }
 0x771   :  { %v319_v21 = vmul.f32 %v317_v20, %v299_v12 }
 0x773   :  { %v326_v22 = vrot.slane %v319_v21, 4 }
 0x775   :  { %327 = vrot.lane.b32.xlu2 %v326_v22, %s1398_s30 }
 0x7cf   :  { %v328_v23 = vpop.permute.xlu2 %327 }
 0x7d0   :  { %1225 = vmatmul.msk.f32.vlgmr.msrb.gmra.mxu3 %vm126_vm3, %v328_v23 }
 0x7d1   :  { %732 = vmatpush.msrb.mxu3 %v1590_v63 }
 0x7d3   :  { %733 = vmatpush.msrb.mxu3 %v1592_v0 }
 0x7d5   :  { %734 = vmatpush.msrb.mxu3 %v1600_v2 }
 0x7d7   :  { %735 = vmatpush.msrb.mxu3 %v1603_v4 }
 0x853   :  { %v348_v24 = vpop.f32.mrf.mxu3 }
 0x854   :  { %v352_v25 = vrot.slane %v348_v24, 2 }
 0x856   :  { %v354_v26 = vadd.f32 %v352_v25, %v1516_v32  ;;  %v1232_v25 = vld [vmem:[%s1823_s4 + $0x6] sm:$0x3] }
 0x858   :  { %v355_v27 = vmul.f32 %v354_v26, %v1518_v34 }
 0x85a   :  { %1282 = vtanh.f32 %v355_v27 }
 0x860   :  { %v1283_v28 = vpop.eup %1282 }
 0x861   :  { %v357_v30 = vmul.f32 %v1283_v28, %v1518_v34 }
 0x863   :  { %v358_v31 = vadd.f32 %v357_v30, %v1522_v38 }
 0x865   :  { %364 = vrot.lane.b32.xlu0 %v358_v31, %s1397_s27  ;;  %v362_v37 = vmul.f32 %v360_v36, %v358_v31 }
 0x8d7   :  { %v365_v33 = vpop.permute.xlu0 %364 }
 0x8d8   :  { %v367_v35 = vmul.f32 %v365_v33, %v358_v31 }
 0x8da   :  { %369 = vrot.lane.b32.xlu1 %v367_v35, %s1398_s30 }
 0x94c   :  { %v370_v39 = vpop.permute.xlu1 %369 }
 0x94d   :  { %v372_v40 = vadd.f32 %v370_v39, %v362_v37 }
 0x94f   :  { %1284 = vtanh.f32 %v372_v40  ;;  %v416_v29 = vrot.slane %v372_v40, 6 }
 0x955   :  { %v1285_v32 = vpop.eup %1284 }
 0x956   :  { %375 = vrot.lane.b32.xlu2 %v1285_v32, %s1397_s27 }
 0x9b0   :  { %v376_v41 = vpop.permute.xlu2 %375 }
 0x9b1   :  { %v378_v42 = vmul.f32 %v376_v41, %v358_v31 }
 0x9b3   :  { %v385_v43 = vrot.slane %v378_v42, 6 }
 0x9b5   :  { %386 = vrot.lane.b32.xlu0 %v385_v43, %s1398_s30 }
 0xa27   :  { %v387_v44 = vpop.permute.xlu0 %386 }
 0xa28   :  { %1226 = vmatmul.msk.f32.vlgmr.msra.gmra.mxu1 %vm126_vm3, %v387_v44 }
 0xaa5   :  { %v407_v47 = vpop.f32.mrf.mxu1 }
 0xaa6   :  { %v410_v48 = vadd.f32 %v407_v47, %v1571_v46 }
 0xaa8   :  { %v411_v49 = vmul.f32 %v410_v48, %v1518_v34 }
 0xaaa   :  { %1286 = vtanh.f32 %v411_v49 }
 0xab0   :  { %v1287_v50 = vpop.eup %1286 }
 0xab1   :  { %v413_v51 = vmul.f32 %v1287_v50, %v1518_v34 }
 0xab3   :  { %v414_v52 = vadd.f32 %v413_v51, %v1522_v38 }
 0xab5   :  { %420 = vrot.lane.b32.xlu1 %v414_v52, %s1397_s27  ;;  %v418_v55 = vmul.f32 %v416_v29, %v414_v52 }
 0xb27   :  { %v421_v53 = vpop.permute.xlu1 %420 }
 0xb28   :  { %v423_v54 = vmul.f32 %v421_v53, %v414_v52 }
 0xb2a   :  { %425 = vrot.lane.b32.xlu2 %v423_v54, %s1398_s30 }
 0xb32   :  { %262 = vrot.lane.b32.xlu2 %v1547_v3, %s1398_s30  ;;  %v627_v3 = vld [vmem:[#allocation4 + $0x58] sm:$0xff] }
 0xb33   :  { %654 = vmatpush.msrb.mxu1 %v627_v3 }
 0xb35   :  { %655 = vmatpush.msrb.mxu1 %v626_v5 }
 0xb37   :  { %656 = vmatpush.msrb.mxu1 %v625_v6 }
 0xb39   :  { %1016 = vmatpush.msra.mxu1 %v1590_v63 }
 0xb3b   :  { %1017 = vmatpush.msra.mxu1 %v1592_v0 }
 0xb3d   :  { %1018 = vmatpush.msra.mxu1 %v1600_v2 }
 0xb3f   :  { %1019 = vmatpush.msra.mxu1 %v1603_v4 }
 0xb84   :  { %v426_v56 = vpop.permute.xlu2 %425 }
 0xb85   :  { %v1581_v57 = vadd.f32 %v426_v56, %v418_v55 }
 0xb87   :  { %1288 = vtanh.f32 %v1581_v57  ;;  %v471_v35 = vrot.slane %v1581_v57, 6 }
 0xb8c   :  { %v263_v58 = vpop.permute.xlu2 %262 }
 0xb8d   :  { %v1289_v59 = vpop.eup %1288  ;;  %266 = vst.msk [vmem:[#allocation2] sm:$0xc] %vm265_vm8, %v263_v58 }
 0xb8e   :  { %431 = vrot.lane.b32.xlu0 %v1289_v59, %s1397_s27 }
 0xb96   :  { %321 = vrot.lane.b32.xlu0 %v319_v21, %s1398_s30 }
 0xc00   :  { %v432_v60 = vpop.permute.xlu0 %431 }
 0xc01   :  { %v434_v61 = vmul.f32 %v432_v60, %v414_v52 }
 0xc03   :  { %436 = vrot.lane.b32.xlu1 %v434_v61, %s1398_s30 }
 0xc08   :  { %v322_v62 = vpop.permute.xlu0 %321 }
 0xc09   :  { %325 = vst.msk [vmem:[#allocation2] sm:$0x30] %vm324_vm9, %v322_v62 }
 0xc0b   :  { %380 = vrot.lane.b32.xlu1 %v378_v42, %s1398_s30 }
 0xc75   :  { %v437_v7 = vpop.permute.xlu1 %436 }
 0xc76   :  { %439 = vst.msk [vmem:[#allocation2 + $0x8] sm:$0x3] %vm209_vm7, %v437_v7  ;;  %1227 = vmatmul.msk.f32.vlgmr.msrb.gmra.mxu2 %vm126_vm3, %v437_v7 }
 0xc77   :  { %848 = vmatpush.msrb.mxu2 %v1590_v63 }
 0xc79   :  { %849 = vmatpush.msrb.mxu2 %v1592_v0 }
 0xc7b   :  { %850 = vmatpush.msrb.mxu2 %v1600_v2 }
 0xc7d   :  { %v381_v9 = vpop.permute.xlu1 %380  ;;  %851 = vmatpush.msrb.mxu2 %v1603_v4 }
 0xc7e   :  { %384 = vst.msk [vmem:[#allocation2] sm:$0xc0] %vm383_vm10, %v381_v9  ;;  %1235 = vmatmul.msk.f32.vlgmr.msra.gmra.mxu2 %vm126_vm3, %v1231_v8 }
 0xc7f   :  { %1074 = vmatpush.msra.mxu2 %v1590_v63 }
 0xc81   :  { %1075 = vmatpush.msra.mxu2 %v1592_v0 }
 0xc83   :  { %1076 = vmatpush.msra.mxu2 %v1600_v2 }
 0xc85   :  { %v618_v10 = vld [vmem:[#allocation2] sm:$0xff]  ;;  %1077 = vmatpush.msra.mxu2 %v1603_v4 }
 0xc86   :  { %1233 = vmatmul.msk.f32.vlgmr.msrb.gmra.mxu1 %vm126_vm3, %v618_v10 }
 0xcf9   :  { %v459_v11 = vpop.f32.mrf.mxu2 }
 0xcfa   :  { %v463_v12 = vrot.slane %v459_v11, 6 }
 0xcfc   :  { %v465_v13 = vadd.f32 %v463_v12, %v1571_v46 }
 0xcfe   :  { %v466_v14 = vmul.f32 %v465_v13, %v1518_v34 }
 0xd00   :  { %1290 = vtanh.f32 %v466_v14 }
 0xd01   :  { %v684_v17 = vpop.f32.mrf.mxu2 }
 0xd03   :  { %v658_v16 = vpop.f32.mrf.mxu1 }
 0xd04   :  { %v1635_v18 = vadd.f32 %v1632_v15, %v658_v16 }
 0xd06   :  { %v1291_v19 = vpop.eup %1290  ;;  %v687_v20 = vadd.f32 %v684_v17, %v1635_v18 }
 0xd07   :  { %v468_v21 = vmul.f32 %v1291_v19, %v1518_v34 }
 0xd08   :  { %v688_v22 = vmul.f32 %v687_v20, %v1518_v34 }
 0xd09   :  { %v469_v23 = vadd.f32 %v468_v21, %v1522_v38 }
 0xd0a   :  { %1292 = vtanh.f32 %v688_v22 }
 0xd0b   :  { %475 = vrot.lane.b32.xlu2 %v469_v23, %s1397_s27  ;;  %v473_v36 = vmul.f32 %v471_v35, %v469_v23 }
 0xd10   :  { %v1293_v24 = vpop.eup %1292 }
 0xd11   :  { %v690_v26 = vmul.f32 %v1293_v24, %v1518_v34 }
 0xd13   :  { %693 = vrot.lane.b32.xlu2 %v1232_v25, %s1398_s30  ;;  %v691_v27 = vadd.f32 %v690_v26, %v1522_v38 }
 0xd15   :  { %698 = vrot.lane.b32.xlu0 %v691_v27, %s1397_s27 }
 0xd65   :  { %v476_v28 = vpop.permute.xlu2 %475 }
 0xd66   :  { %v478_v30 = vmul.f32 %v476_v28, %v469_v23 }
 0xd68   :  { %480 = vrot.lane.b32.xlu1 %v478_v30, %s1398_s30 }
 0xd6d   :  { %v694_v32 = vpop.permute.xlu2 %693 }
 0xd6e   :  { %v696_v41 = vmul.f32 %v694_v32, %v691_v27 }
 0xd87   :  { %v699_v31 = vpop.permute.xlu0 %698 }
 0xd88   :  { %v701_v33 = vmul.f32 %v699_v31, %v691_v27 }
 0xd8a   :  { %703 = vrot.lane.b32.xlu0 %v701_v33, %s1398_s30 }
 0xdda   :  { %v481_v37 = vpop.permute.xlu1 %480 }
 0xddb   :  { %v483_v39 = vadd.f32 %v481_v37, %v473_v36 }
 0xddd   :  { %1294 = vtanh.f32 %v483_v39  ;;  %v529_v10 = vrot.slane %v483_v39, 6 }
 0xde3   :  { %v1295_v40 = vpop.eup %1294 }
 0xde4   :  { %486 = vrot.lane.b32.xlu1 %v1295_v40, %s1397_s27 }
 0xdfc   :  { %v704_v42 = vpop.permute.xlu0 %703 }
 0xdfd   :  { %v706_v43 = vadd.f32 %v704_v42, %v696_v41 }
 0xdff   :  { %1296 = vtanh.f32 %v706_v43  ;;  %v749_v14 = vrot.slane %v706_v43, 6 }
 0xe05   :  { %v1297_v44 = vpop.eup %1296 }
 0xe06   :  { %709 = vrot.lane.b32.xlu2 %v1297_v44, %s1397_s27 }
 0xe56   :  { %v487_v45 = vpop.permute.xlu1 %486 }
 0xe57   :  { %v1654_v47 = vmul.f32 %v487_v45, %v469_v23 }
 0xe59   :  { %v495_v48 = vrot.slane %v1654_v47, 2 }
 0xe5b   :  { %496 = vrot.lane.b32.xlu0 %v495_v48, %s1398_s30 }
 0xe60   :  { %v710_v49 = vpop.permute.xlu2 %709 }
 0xe61   :  { %v712_v50 = vmul.f32 %v710_v49, %v691_v27 }
 0xe63   :  { %714 = vrot.lane.b32.xlu1 %v712_v50, %s1398_s30 }
 0xecd   :  { %v497_v51 = vpop.permute.xlu0 %496 }
 0xece   :  { %1228 = vmatmul.msk.f32.vlgmr.msra.gmra.mxu3 %vm126_vm3, %v497_v51 }
 0xecf   :  { %906 = vmatpush.msra.mxu3 %v1590_v63 }
 0xed1   :  { %907 = vmatpush.msra.mxu3 %v1592_v0 }
 0xed3   :  { %908 = vmatpush.msra.mxu3 %v1600_v2 }
 0xed5   :  { %v715_v52 = vpop.permute.xlu1 %714  ;;  %909 = vmatpush.msra.mxu3 %v1603_v4 }
 0xed6   :  { %717 = vst.msk [vmem:[#allocation3] sm:$0x3] %vm209_vm7, %v715_v52  ;;  %1236 = vmatmul.msk.f32.vlgmr.msrb.gmra.mxu3 %vm126_vm3, %v715_v52 }
 0xf51   :  { %v517_v53 = vpop.f32.mrf.mxu3 }
 0xf52   :  { %v521_v54 = vrot.slane %v517_v53, 4 }
 0xf54   :  { %v523_v29 = vadd.f32 %v521_v54, %v1571_v46 }
 0xf56   :  { %v524_v55 = vmul.f32 %v523_v29, %v1518_v34 }
 0xf58   :  { %1298 = vtanh.f32 %v524_v55 }
 0xf59   :  { %v737_v56 = vpop.f32.mrf.mxu3 }
 0xf5a   :  { %v741_v57 = vrot.slane %v737_v56, 6 }
 0xf5c   :  { %v743_v58 = vadd.f32 %v741_v57, %v1635_v18 }
 0xf5e   :  { %v1299_v59 = vpop.eup %1298  ;;  %v744_v60 = vmul.f32 %v743_v58, %v1518_v34 }
 0xf5f   :  { %v526_v61 = vmul.f32 %v1299_v59, %v1518_v34 }
 0xf60   :  { %1300 = vtanh.f32 %v744_v60 }
 0xf61   :  { %v527_v62 = vadd.f32 %v526_v61, %v1522_v38 }
 0xf63   :  { %533 = vrot.lane.b32.xlu2 %v527_v62, %s1397_s27  ;;  %v531_v11 = vmul.f32 %v529_v10, %v527_v62 }
 0xf66   :  { %v1301_v1 = vpop.eup %1300 }
 0xf67   :  { %v746_v3 = vmul.f32 %v1301_v1, %v1518_v34 }
 0xf69   :  { %v747_v5 = vadd.f32 %v746_v3, %v1522_v38 }
 0xf6b   :  { %753 = vrot.lane.b32.xlu0 %v747_v5, %s1397_s27  ;;  %v751_v16 = vmul.f32 %v749_v14, %v747_v5 }
 0xfbd   :  { %v534_v6 = vpop.permute.xlu2 %533 }
 0xfbe   :  { %v536_v7 = vmul.f32 %v534_v6, %v527_v62 }
 0xfc0   :  { %538 = vrot.lane.b32.xlu1 %v536_v7, %s1398_s30 }
 0xfdd   :  { %v754_v8 = vpop.permute.xlu0 %753 }
 0xfde   :  { %v756_v9 = vmul.f32 %v754_v8, %v747_v5 }
 0xfe0   :  { %758 = vrot.lane.b32.xlu2 %v756_v9, %s1398_s30 }
0x1032   :  { %v539_v12 = vpop.permute.xlu1 %538 }
0x1033   :  { %v1678_v13 = vadd.f32 %v539_v12, %v531_v11 }
0x1035   :  { %1302 = vtanh.f32 %v1678_v13  ;;  %v587_v60 = vrot.slane %v1678_v13, 6 }
0x103a   :  { %v759_v17 = vpop.permute.xlu2 %758 }
0x103b   :  { %v1303_v19 = vpop.eup %1302  ;;  %v761_v20 = vadd.f32 %v759_v17, %v751_v16 }
0x103c   :  { %544 = vrot.lane.b32.xlu0 %v1303_v19, %s1397_s27 }
0x103d   :  { %1304 = vtanh.f32 %v761_v20  ;;  %v807_v45 = vrot.slane %v761_v20, 6 }
0x1043   :  { %v1305_v21 = vpop.eup %1304 }
0x1044   :  { %764 = vrot.lane.b32.xlu1 %v1305_v21, %s1397_s27 }
0x10ae   :  { %v545_v22 = vpop.permute.xlu0 %544 }
0x10af   :  { %v1683_v23 = vmul.f32 %v545_v22, %v527_v62 }
0x10b1   :  { %v553_v24 = vrot.slane %v1683_v23, 4 }
0x10b3   :  { %554 = vrot.lane.b32.xlu2 %v553_v24, %s1398_s30 }
0x10b6   :  { %v765_v25 = vpop.permute.xlu1 %764 }
0x10b7   :  { %v1687_v26 = vmul.f32 %v765_v25, %v747_v5 }
0x10b9   :  { %v773_v27 = vrot.slane %v1687_v26, 2 }
0x10bb   :  { %774 = vrot.lane.b32.xlu0 %v773_v27, %s1398_s30 }
0x110d   :  { %v555_v28 = vpop.permute.xlu2 %554 }
0x110e   :  { %1229 = vmatmul.msk.f32.vlgmr.msra.gmra.mxu0 %vm126_vm3, %v555_v28 }
0x110f   :  { %958 = vmatpush.msra.mxu0 %v1590_v63 }
0x1111   :  { %959 = vmatpush.msra.mxu0 %v1592_v0 }
0x1113   :  { %960 = vmatpush.msra.mxu0 %v1600_v2 }
0x1115   :  { %961 = vmatpush.msra.mxu0 %v1603_v4 }
0x112d   :  { %v775_v30 = vpop.permute.xlu0 %774 }
0x112e   :  { %1237 = vmatmul.msk.f32.vlgmr.msrb.gmra.mxu0 %vm126_vm3, %v775_v30 }
0x118b   :  { %v575_v31 = vpop.f32.mrf.mxu0 }
0x118c   :  { %v579_v2 = vrot.slane %v575_v31, 2 }
0x118e   :  { %v581_v4 = vadd.f32 %v579_v2, %v1571_v46 }
0x1190   :  { %v582_v40 = vmul.f32 %v581_v4, %v1518_v34 }
0x11ab   :  { %v795_v33 = vpop.f32.mrf.mxu0 }
0x11ac   :  { %v799_v35 = vrot.slane %v795_v33, 4 }
0x11ae   :  { %v801_v36 = vadd.f32 %v799_v35, %v1635_v18 }
0x11b0   :  { %v802_v37 = vmul.f32 %v801_v36, %v1518_v34 }
0x11b2   :  { %1306 = vtanh.f32 %v802_v37 }
0x11b3   :  { %1308 = vtanh.f32 %v582_v40 }
0x11b8   :  { %v1307_v39 = vpop.eup %1306 }
0x11b9   :  { %v804_v63 = vmul.f32 %v1307_v39, %v1518_v34  ;;  %v1309_v42 = vpop.eup %1308 }
0x11ba   :  { %v584_v43 = vmul.f32 %v1309_v42, %v1518_v34 }
0x11bb   :  { %v805_v0 = vadd.f32 %v804_v63, %v1522_v38 }
0x11bc   :  { %v585_v44 = vadd.f32 %v584_v43, %v1522_v38 }
0x11bd   :  { %811 = vrot.lane.b32.xlu1 %v805_v0, %s1397_s27  ;;  %v809_v48 = vmul.f32 %v807_v45, %v805_v0 }
0x11be   :  { %v589_v1 = vmul.f32 %v587_v60, %v585_v44 }
0x122f   :  { %v812_v32 = vpop.permute.xlu1 %811 }
0x1230   :  { %v814_v41 = vmul.f32 %v812_v32, %v805_v0 }
0x1232   :  { %816 = vrot.lane.b32.xlu2 %v814_v41, %s1398_s30 }
0x123a   :  { %591 = vrot.lane.b32.xlu2 %v585_v44, %s1397_s27 }
0x128c   :  { %v817_v49 = vpop.permute.xlu2 %816 }
0x128d   :  { %v819_v50 = vadd.f32 %v817_v49, %v809_v48 }
0x128f   :  { %1310 = vtanh.f32 %v819_v50  ;;  %v865_v11 = vrot.slane %v819_v50, 6 }
0x1294   :  { %v592_v54 = vpop.permute.xlu2 %591 }
0x1295   :  { %v1311_v46 = vpop.eup %1310  ;;  %v594_v29 = vmul.f32 %v592_v54, %v585_v44 }
0x1296   :  { %822 = vrot.lane.b32.xlu0 %v1311_v46, %s1397_s27 }
0x1308   :  { %v823_v51 = vpop.permute.xlu0 %822 }
0x1309   :  { %v1709_v52 = vmul.f32 %v823_v51, %v805_v0 }
0x130b   :  { %v831_v53 = vrot.slane %v1709_v52, 4 }
0x130d   :  { %832 = vrot.lane.b32.xlu1 %v831_v53, %s1398_s30 }
0x1315   :  { %596 = vrot.lane.b32.xlu1 %v594_v29, %s1398_s30 }
0x137f   :  { %v833_v55 = vpop.permute.xlu1 %832 }
0x1380   :  { %1238 = vmatmul.msk.f32.vlgmr.msrb.gmra.mxu2 %vm126_vm3, %v833_v55 }
0x1387   :  { %v597_v61 = vpop.permute.xlu1 %596 }
0x1388   :  { %v1719_v5 = vadd.f32 %v597_v61, %v589_v1 }
0x1403   :  { %v853_v56 = vpop.f32.mrf.mxu2 }
0x1404   :  { %v857_v57 = vrot.slane %v853_v56, 2 }
0x1406   :  { %v859_v58 = vadd.f32 %v857_v57, %v1635_v18 }
0x1408   :  { %v860_v59 = vmul.f32 %v859_v58, %v1518_v34 }
0x140a   :  { %1312 = vtanh.f32 %v860_v59 }
0x140b   :  { %1314 = vtanh.f32 %v1719_v5 }
0x1410   :  { %v1313_v62 = vpop.eup %1312 }
0x1411   :  { %v862_v3 = vmul.f32 %v1313_v62, %v1518_v34  ;;  %v1315_v7 = vpop.eup %1314 }
0x1413   :  { %v863_v6 = vadd.f32 %v862_v3, %v1522_v38 }
0x1415   :  { %869 = vrot.lane.b32.xlu0 %v863_v6, %s1397_s27  ;;  %v867_v12 = vmul.f32 %v865_v11, %v863_v6 }
0x141d   :  { %602 = vrot.lane.b32.xlu0 %v1315_v7, %s1397_s27 }
0x1425   :  { %549 = vrot.lane.b32.xlu0 %v1683_v23, %s1398_s30 }
0x1487   :  { %v870_v18 = vpop.permute.xlu0 %869 }
0x1488   :  { %v872_v8 = vmul.f32 %v870_v18, %v863_v6 }
0x148a   :  { %874 = vrot.lane.b32.xlu2 %v872_v8, %s1398_s30 }
0x148f   :  { %v603_v9 = vpop.permute.xlu0 %602 }
0x1490   :  { %v605_v19 = vmul.f32 %v603_v9, %v585_v44 }
0x1492   :  { %491 = vrot.lane.b32.xlu2 %v1654_v47, %s1398_s30 }
0x1497   :  { %v550_v10 = vpop.permute.xlu0 %549 }
0x1498   :  { %552 = vst.msk [vmem:[#allocation2 + $0x8] sm:$0x30] %vm324_vm9, %v550_v10 }
0x14e4   :  { %v875_v13 = vpop.permute.xlu2 %874 }
0x14e5   :  { %v877_v14 = vadd.f32 %v875_v13, %v867_v12 }
0x14e7   :  { %1316 = vtanh.f32 %v877_v14  ;;  %v920_v63 = vrot.slane %v877_v14, 6 }
0x14ec   :  { %v492_v16 = vpop.permute.xlu2 %491 }
0x14ed   :  { %v1317_v17 = vpop.eup %1316  ;;  %494 = vst.msk [vmem:[#allocation2 + $0x8] sm:$0xc] %vm265_vm8, %v492_v16 }
0x14ee   :  { %880 = vrot.lane.b32.xlu1 %v1317_v17, %s1397_s27 }
0x14f6   :  { %607 = vrot.lane.b32.xlu1 %v605_v19, %s1398_s30 }
0x1560   :  { %v881_v20 = vpop.permute.xlu1 %880 }
0x1561   :  { %v1734_v21 = vmul.f32 %v881_v20, %v863_v6 }
0x1563   :  { %v889_v47 = vrot.slane %v1734_v21, 6 }
0x1565   :  { %890 = vrot.lane.b32.xlu2 %v889_v47, %s1398_s30 }
0x1568   :  { %v608_v22 = vpop.permute.xlu1 %607 }
0x1569   :  { %610 = vst.msk [vmem:[#allocation2 + $0x8] sm:$0xc0] %vm383_vm10, %v608_v22 }
0x156a   :  { %611 = vst.msk [vmem:[%s1825_s6 - $0x6] sm:$0xc0] %vm383_vm10, %v608_v22 }
0x1570   :  { %v619_v23 = vld [vmem:[#allocation2 + $0x8] sm:$0xff] }
0x1571   :  { %1234 = vmatmul.msk.f32.gmra.mxu1 %vm126_vm3, %v619_v23 }
0x15bf   :  { %v891_v24 = vpop.permute.xlu2 %890 }
0x15c0   :  { %1239 = vmatmul.msk.f32.vlgmr.msra.gmra.mxu3 %vm126_vm3, %v891_v24 }
0x15ee   :  { %v661_v25 = vpop.f32.mrf.mxu1 }
0x15ef   :  { %v1746_v27 = vadd.f32 %v1632_v15, %v661_v25 }
0x1643   :  { %v911_v28 = vpop.f32.mrf.mxu3 }
0x1644   :  { %v914_v30 = vadd.f32 %v911_v28, %v1746_v27 }
0x1646   :  { %v915_v31 = vmul.f32 %v914_v30, %v1518_v34 }
0x1648   :  { %1318 = vtanh.f32 %v915_v31 }
0x164e   :  { %v1319_v33 = vpop.eup %1318 }
0x164f   :  { %v917_v35 = vmul.f32 %v1319_v33, %v1518_v34 }
0x1651   :  { %v918_v36 = vadd.f32 %v917_v35, %v1522_v38 }
0x1653   :  { %924 = vrot.lane.b32.xlu0 %v918_v36, %s1397_s27  ;;  %v922_v15 = vmul.f32 %v920_v63, %v918_v36  ;;  %v1128_v63 = vld [vmem:[#allocation6 + $0x18] sm:$0xff] }
0x1654   :  { %1166 = vmatpush.msrb.mxu3 %v1128_v63 }
0x16c5   :  { %v925_v37 = vpop.permute.xlu0 %924 }
0x16c6   :  { %v927_v39 = vmul.f32 %v925_v37, %v918_v36 }
0x16c8   :  { %929 = vrot.lane.b32.xlu1 %v927_v39, %s1398_s30 }
0x173a   :  { %v930_v0 = vpop.permute.xlu1 %929 }
0x173b   :  { %v932_v2 = vadd.f32 %v930_v0, %v922_v15  ;;  %v1127_v15 = vld [vmem:[#allocation6 + $0x10] sm:$0xff]  ;;  %v1126_v0 = vld [vmem:[#allocation6 + $0x8] sm:$0xff] }
0x173c   :  { %1167 = vmatpush.msrb.mxu3 %v1127_v15 }
0x173d   :  { %1320 = vtanh.f32 %v932_v2  ;;  %v975_v53 = vrot.slane %v932_v2, 6  ;;  %v1125_v2 = vld [vmem:[#allocation6] sm:$0xff] }
0x173e   :  { %1168 = vmatpush.msrb.mxu3 %v1126_v0 }
0x1740   :  { %1169 = vmatpush.msrb.mxu3 %v1125_v2 }
0x1743   :  { %v1321_v4 = vpop.eup %1320 }
0x1744   :  { %935 = vrot.lane.b32.xlu2 %v1321_v4, %s1397_s27 }
0x179e   :  { %v936_v40 = vpop.permute.xlu2 %935 }
0x179f   :  { %v938_v32 = vmul.f32 %v936_v40, %v918_v36 }
0x17a1   :  { %940 = vrot.lane.b32.xlu0 %v938_v32, %s1398_s30 }
0x1813   :  { %v941_v41 = vpop.permute.xlu0 %940 }
0x1814   :  { %943 = vst.msk [vmem:[#allocation3 + $0x8] sm:$0x3] %vm209_vm7, %v941_v41  ;;  %1240 = vmatmul.msk.f32.vlgmr.msra.gmra.mxu0 %vm126_vm3, %v941_v41 }
0x1891   :  { %v963_v42 = vpop.f32.mrf.mxu0 }
0x1892   :  { %v967_v43 = vrot.slane %v963_v42, 6 }
0x1894   :  { %v969_v44 = vadd.f32 %v967_v43, %v1746_v27  ;;  %v1144_v43 = vld [vmem:[#allocation6 + $0x98] sm:$0xff] }
0x1896   :  { %v970_v45 = vmul.f32 %v969_v44, %v1518_v34  ;;  %v1143_v44 = vld [vmem:[#allocation6 + $0x90] sm:$0xff] }
0x1898   :  { %1322 = vtanh.f32 %v970_v45  ;;  %v1142_v45 = vld [vmem:[#allocation6 + $0x88] sm:$0xff] }
0x189e   :  { %v1323_v48 = vpop.eup %1322 }
0x189f   :  { %v972_v49 = vmul.f32 %v1323_v48, %v1518_v34  ;;  %v1141_v48 = vld [vmem:[#allocation6 + $0x80] sm:$0xff] }
0x18a1   :  { %v973_v50 = vadd.f32 %v972_v49, %v1522_v38  ;;  %v1140_v49 = vld [vmem:[#allocation6 + $0x78] sm:$0xff] }
0x18a3   :  { %979 = vrot.lane.b32.xlu1 %v973_v50, %s1397_s27  ;;  %v977_v54 = vmul.f32 %v975_v53, %v973_v50  ;;  %v1136_v53 = vld [vmem:[#allocation6 + $0x58] sm:$0xff] }
0x1915   :  { %v980_v46 = vpop.permute.xlu1 %979 }
0x1916   :  { %v982_v51 = vmul.f32 %v980_v46, %v973_v50  ;;  %v1138_v46 = vld [vmem:[#allocation6 + $0x68] sm:$0xff] }
0x1918   :  { %984 = vrot.lane.b32.xlu2 %v982_v51, %s1398_s30  ;;  %v1137_v51 = vld [vmem:[#allocation6 + $0x60] sm:$0xff] }
0x1972   :  { %v985_v29 = vpop.permute.xlu2 %984 }
0x1973   :  { %v987_v55 = vadd.f32 %v985_v29, %v977_v54  ;;  %v1135_v54 = vld [vmem:[#allocation6 + $0x50] sm:$0xff] }
0x1975   :  { %1324 = vtanh.f32 %v987_v55  ;;  %v1033_v10 = vrot.slane %v987_v55, 6 }
0x197b   :  { %v1325_v56 = vpop.eup %1324 }
0x197c   :  { %990 = vrot.lane.b32.xlu0 %v1325_v56, %s1397_s27  ;;  %v1134_v56 = vld [vmem:[#allocation6 + $0x48] sm:$0xff] }
0x19ee   :  { %v991_v57 = vpop.permute.xlu0 %990 }
0x19ef   :  { %v993_v58 = vmul.f32 %v991_v57, %v973_v50  ;;  %v1139_v50 = vld [vmem:[#allocation6 + $0x70] sm:$0xff]  ;;  %v1133_v57 = vld [vmem:[#allocation6 + $0x40] sm:$0xff] }
0x19f1   :  { %v999_v59 = vrot.slane %v993_v58, 2 }
0x19f3   :  { %1000 = vrot.lane.b32.xlu1 %v999_v59, %s1398_s30  ;;  %v1131_v59 = vld [vmem:[#allocation6 + $0x30] sm:$0xff] }
0x1a65   :  { %v1001_v60 = vpop.permute.xlu1 %1000 }
0x1a66   :  { %1241 = vmatmul.msk.f32.vlgmr.msra.gmra.mxu1 %vm126_vm3, %v1001_v60  ;;  %v1130_v60 = vld [vmem:[#allocation6 + $0x28] sm:$0xff] }
0x1ae3   :  { %v1021_v61 = vpop.f32.mrf.mxu1 }
0x1ae4   :  { %v1025_v62 = vrot.slane %v1021_v61, 4  ;;  %v1268_v61 = vld [vmem:[#allocation6 + $0x20] ss:$0 sm:$0xff] }
0x1ae6   :  { %v1027_v1 = vadd.f32 %v1025_v62, %v1746_v27 }
0x1ae8   :  { %v1028_v3 = vmul.f32 %v1027_v1, %v1518_v34 }
0x1aea   :  { %1326 = vtanh.f32 %v1028_v3 }
0x1af0   :  { %v1327_v6 = vpop.eup %1326 }
0x1af1   :  { %v1030_v7 = vmul.f32 %v1327_v6, %v1518_v34 }
0x1af3   :  { %v1031_v18 = vadd.f32 %v1030_v7, %v1522_v38 }
0x1af5   :  { %1037 = vrot.lane.b32.xlu2 %v1031_v18, %s1397_s27  ;;  %v1035_v11 = vmul.f32 %v1033_v10, %v1031_v18 }
0x1b4f   :  { %v1038_v8 = vpop.permute.xlu2 %1037 }
0x1b50   :  { %v1040_v9 = vmul.f32 %v1038_v8, %v1031_v18  ;;  %v1269_v8 = vld [vmem:[#allocation6 + $0xa8] ss:$0 sm:$0xff] }
0x1b52   :  { %1042 = vrot.lane.b32.xlu0 %v1040_v9, %s1398_s30 }
0x1bc4   :  { %v1043_v12 = vpop.permute.xlu0 %1042 }
0x1bc5   :  { %v1045_v13 = vadd.f32 %v1043_v12, %v1035_v11 }
0x1bc7   :  { %1328 = vtanh.f32 %v1045_v13 }
0x1bcd   :  { %v1329_v14 = vpop.eup %1328 }
0x1bce   :  { %1048 = vrot.lane.b32.xlu1 %v1329_v14, %s1397_s27 }
0x1c40   :  { %v1049_v16 = vpop.permute.xlu1 %1048 }
0x1c41   :  { %v1051_v17 = vmul.f32 %v1049_v16, %v1031_v18 }
0x1c43   :  { %v1057_v19 = vrot.slane %v1051_v17, 4 }
0x1c45   :  { %1058 = vrot.lane.b32.xlu2 %v1057_v19, %s1398_s30 }
0x1c9f   :  { %v1059_v20 = vpop.permute.xlu2 %1058 }
0x1ca0   :  { %1242 = vmatmul.msk.f32.vlgmr.msra.gmra.mxu2 %vm126_vm3, %v1059_v20 }
0x1d23   :  { %v1079_v47 = vpop.f32.mrf.mxu2 }
0x1d24   :  { %v1083_v22 = vrot.slane %v1079_v47, 2 }
0x1d26   :  { %v1085_v23 = vadd.f32 %v1083_v22, %v1746_v27 }
0x1d28   :  { %v1086_v24 = vmul.f32 %v1085_v23, %v1518_v34 }
0x1d2a   :  { %1330 = vtanh.f32 %v1086_v24 }
0x1d30   :  { %v1331_v25 = vpop.eup %1330 }
0x1d31   :  { %v1088_v28 = vmul.f32 %v1331_v25, %v1518_v34 }
0x1d33   :  { %v1089_v30 = vadd.f32 %v1088_v28, %v1522_v38 }
0x1d35   :  { %1095 = vrot.lane.b32.xlu0 %v1089_v30, %s1397_s27 }
0x1d3d   :  { %769 = vrot.lane.b32.xlu0 %v1687_v26, %s1398_s30  ;;  %v1091_v26 = vrot.slane %v1045_v13, 6 }
0x1d45   :  { %995 = vrot.lane.b32.xlu0 %v993_v58, %s1398_s30  ;;  %v1132_v58 = vld [vmem:[#allocation6 + $0x38] sm:$0xff] }
0x1d4d   :  { %613 = vrot.lane.b32.xlu0 %v1719_v5, %s1399_s3  ;;  %v1093_v5 = vmul.f32 %v1091_v26, %v1089_v30 }
0x1da7   :  { %v1096_v31 = vpop.permute.xlu0 %1095 }
0x1da8   :  { %v1098_v27 = vmul.f32 %v1096_v31, %v1089_v30 }
0x1daa   :  { %1100 = vrot.lane.b32.xlu1 %v1098_v27, %s1398_s30 }
0x1daf   :  { %v770_v33 = vpop.permute.xlu0 %769 }
0x1db0   :  { %772 = vst.msk [vmem:[#allocation3] sm:$0xc] %vm265_vm8, %v770_v33 }
0x1db2   :  { %827 = vrot.lane.b32.xlu1 %v1709_v52, %s1398_s30 }
0x1db7   :  { %v996_v34 = vpop.permute.xlu0 %995 }
0x1db8   :  { %998 = vst.msk [vmem:[#allocation3 + $0x8] sm:$0xc] %vm265_vm8, %v996_v34 }
0x1dba   :  { %1053 = vrot.lane.b32.xlu1 %v1051_v17, %s1398_s30 }
0x1dbf   :  { %v614_v38 = vpop.permute.xlu0 %613 }
0x1dc0   :  { %1230 = vst.msk [vmem:[%s1825_s6 - $0x2] sm:$0xc0] %vm383_vm10, %v614_v38 }
0x1e1c   :  { %v1101_v35 = vpop.permute.xlu1 %1100 }
0x1e1d   :  { %v1103_v36 = vadd.f32 %v1101_v35, %v1093_v5 }
0x1e1f   :  { %1332 = vtanh.f32 %v1103_v36  ;;  %1118 = vrot.lane.b32.xlu1 %v1103_v36, %s1399_s3 }
0x1e24   :  { %v828_v37 = vpop.permute.xlu1 %827 }
0x1e25   :  { %v1333_v39 = vpop.eup %1332  ;;  %830 = vst.msk [vmem:[#allocation3] sm:$0x30] %vm324_vm9, %v828_v37 }
0x1e26   :  { %1106 = vrot.lane.b32.xlu2 %v1333_v39, %s1397_s27 }
0x1e2c   :  { %v1054_v52 = vpop.permute.xlu1 %1053 }
0x1e2d   :  { %1056 = vst.msk [vmem:[#allocation3 + $0x8] sm:$0x30] %vm324_vm9, %v1054_v52 }
0x1e2e   :  { %885 = vrot.lane.b32.xlu2 %v1734_v21, %s1398_s30  ;;  %v1145_v21 = vld [vmem:[#allocation6 + $0xa0] sm:$0xff] }
0x1e2f   :  { %1180 = vmatpush.msrb.mxu0 %v1145_v21 }
0x1e31   :  { %1181 = vmatpush.msrb.mxu0 %v1144_v43 }
0x1e33   :  { %1182 = vmatpush.msrb.mxu0 %v1143_v44 }
0x1e35   :  { %1183 = vmatpush.msrb.mxu0 %v1142_v45 }
0x1e37   :  { %1184 = vmatpush.msrb.mxu0 %v1141_v48 }
0x1e39   :  { %1185 = vmatpush.msrb.mxu0 %v1140_v49 }
0x1e3b   :  { %1186 = vmatpush.msrb.mxu0 %v1139_v50 }
0x1e3d   :  { %1187 = vmatpush.msrb.mxu0 %v1138_v46 }
0x1e3f   :  { %1188 = vmatpush.msrb.mxu0 %v1137_v51 }
0x1e41   :  { %1189 = vmatpush.msrb.mxu0 %v1136_v53 }
0x1e43   :  { %1190 = vmatpush.msrb.mxu0 %v1135_v54 }
0x1e45   :  { %1191 = vmatpush.msrb.mxu0 %v1134_v56 }
0x1e47   :  { %1192 = vmatpush.msrb.mxu0 %v1133_v57 }
0x1e49   :  { %1193 = vmatpush.msrb.mxu0 %v1132_v58 }
0x1e4b   :  { %1194 = vmatpush.msrb.mxu0 %v1131_v59 }
0x1e4d   :  { %1195 = vmatpush.msrb.mxu0 %v1130_v60 }
0x1e80   :  { %v1107_v4 = vpop.permute.xlu2 %1106 }
0x1e81   :  { %v1109_v40 = vmul.f32 %v1107_v4, %v1089_v30 }
0x1e83   :  { %1111 = vrot.lane.b32.xlu2 %v1109_v40, %s1398_s30 }
0x1e88   :  { %v886_v32 = vpop.permute.xlu2 %885 }
0x1e89   :  { %888 = vst.msk [vmem:[#allocation3] sm:$0xc0] %vm383_vm10, %v886_v32 }
0x1e90   :  { %v1123_v41 = vld [vmem:[#allocation3] sm:$0xff] }
0x1e91   :  { %v1119_v42 = vpop.permute.xlu1 %1118  ;;  %1245 = vmatmul.msk.f32.vlgmr.msrb.gmra.mxu3 %vm126_vm3, %v1123_v41 }
0x1e92   :  { %1244 = vst.msk [vmem:[%s1825_s6] sm:$0xc0] %vm383_vm10, %v1119_v42 }
0x1edd   :  { %v1112_v29 = vpop.permute.xlu2 %1111 }
0x1ede   :  { %1114 = vst.msk [vmem:[#allocation3 + $0x8] sm:$0xc0] %vm383_vm10, %v1112_v29 }
0x1edf   :  { %1243 = vst.msk [vmem:[%s1825_s6 - $0x4] sm:$0xc0] %vm383_vm10, %v1112_v29 }
0x1ee5   :  { %v1124_v55 = vld [vmem:[#allocation3 + $0x8] sm:$0xff] }
0x1ee6   :  { %1246 = vmatmul.msk.f32.gmra.mxu3 %vm126_vm3, %v1124_v55 }
0x1f14   :  { %v1171_v62 = vpop.f32.mrf.mxu3 }
0x1f15   :  { %v1172_v1 = vadd.f32 %v1268_v61, %v1171_v62 }
0x1f17   :  { %1334 = vtanh.f32 %v1172_v1 }
0x1f1d   :  { %v1335_v3 = vpop.eup %1334 }
0x1f1e   :  { %1196 = vmatmul.f32.vlgmr.msrb.gmra.mxu0 %v1335_v3 }
0x1f69   :  { %v1174_v6 = vpop.f32.mrf.mxu3 }
0x1f6a   :  { %v1175_v7 = vadd.f32 %v1268_v61, %v1174_v6 }
0x1f6c   :  { %1336 = vtanh.f32 %v1175_v7 }
0x1f72   :  { %v1337_v18 = vpop.eup %1336 }
0x1f73   :  { %1199 = vmatmul.f32.gmra.mxu0 %v1337_v18 }
0x1f9b   :  { %v1197_v9 = vpop.f32.mrf.mxu0 }
0x1f9c   :  { %v1198_v10 = vadd.f32 %v1269_v8, %v1197_v9 }
0x1f9e   :  { %1203 = vst [vmem:[%s1824_s5] sm:$0xff] %v1198_v10 }
0x1ff0   :  { %v1200_v11 = vpop.f32.mrf.mxu0 }
0x1ff1   :  { %v1201_v12 = vadd.f32 %v1269_v8, %v1200_v11 }
0x1ff3   :  { %1204 = vst [vmem:[%s1824_s5 + $0x8] sm:$0xff] %v1201_v12 }
0x1ff4   :  { %1213 = vsyncpa [#allocation5], 1 }
0x1ff5   :  { %1214 = vsyncpa [#allocation7], 1 }

</bundles_post_ra>
